<compile_context>
chip_gen: v6e
topology: v6e:2x2x1
jax: 0.10.0
libtpu: 0.0.40
codegen_flags: <defaults>
</compile_context>

<pallas_src>
import functools
import math

import jax
import jax.numpy as jnp
from jax.experimental import pallas as pl
from jax.experimental.pallas import tpu as pltpu

_TWO_PI = 2.0 * math.pi
_HALF_PI = 0.5 * math.pi


# ----------------------------------------------------------------------------
# Kernels
# ----------------------------------------------------------------------------
def _periodic_kernel_split(x_ref, coef_ref, out_ref, *, n: int, reps: int):
    """Split cos/sin stores (used only when N % 128 == 0: both stores are
    full-width, lane-aligned vst's).

    x_ref:    (TR, 1)       flattened (batch*feature) rows of x
    coef_ref: (L, N)        2*pi-scaled coefficients, L = lcm(F, 8) rows
    out_ref:  (TR, 2N)      [cos | sin] along the lane dimension
    """
    coef = coef_ref[...]
    if reps > 1:
        # Sublane replication to TR rows; rides on idle VPU/XLU slots under
        # the EUP-bound transcendental stream (L is a multiple of 8, so the
        # tile/reshape is layout-trivial).
        coef = jnp.tile(coef, (reps, 1))
    xv = x_ref[...].astype(jnp.float32)                     # (TR, 1)
    phase = xv * coef                                       # (TR, N)
    # cos retired before sin is evaluated -> halves live vreg/VMEM pressure.
    out_ref[:, :n] = jnp.cos(phase).astype(out_ref.dtype)
    out_ref[:, n:] = jnp.sin(phase).astype(out_ref.dtype)


def _periodic_kernel_fused(x_ref, coef2_ref, out_ref, *, n: int, reps: int):
    """Single-transcendental-stream layout for N % 128 != 0.

    x_ref:     (TR, 1)
    coef2_ref: (L, 2N)  = 2*pi*[c | c],  L = lcm(F, 8) rows
    out_ref:   (TR, 2N)
    Uses cos(theta - pi/2) == sin(theta): one cos stream, one full-width
    lane-dense store (no masked half-width vst.msk, no lane-offset shuffles).
    """
    coef2 = coef2_ref[...]
    if reps > 1:
        coef2 = jnp.tile(coef2, (reps, 1))                  # (TR, 2N)
    lane = jax.lax.broadcasted_iota(jnp.int32, (1, 2 * n), 1)
    bias = jnp.where(lane < n, 0.0, -_HALF_PI).astype(jnp.float32)
    xv = x_ref[...].astype(jnp.float32)                     # (TR, 1)
    phase = xv * coef2 + bias                               # (TR, 2N)
    out_ref[...] = jnp.cos(phase).astype(out_ref.dtype)


# ----------------------------------------------------------------------------
# Tiling helpers
# ----------------------------------------------------------------------------
def _packed_sublanes(itemsize: int) -> int:
    # Packed sublane count for the output dtype: 8 (f32), 16 (bf16), 32 (8-bit)
    return max(8, 32 // itemsize)


def _ceil_to(v: int, m: int) -> int:
    return ((v + m - 1) // m) * m


def _pick_block_batch(B: int, F: int, N: int, out_itemsize: int) -> int:
    """Batch rows per grid step (TB): TR = TB*F sublane-aligned for the output
    dtype, ~8 MiB output block per buffer, and >=2 grid steps when possible so
    the parallel grid axis engages both v7x TensorCores."""
    sub = _packed_sublanes(out_itemsize)
    step = sub // math.gcd(sub, F)            # smallest TB with (TB*F) % sub == 0
    target_out_block_bytes = 8 * 1024 * 1024  # per-buffer output block budget
    bytes_per_batch_row = F * 2 * N * out_itemsize + F * 4
    tb = max(step,
             (target_out_block_bytes // max(1, bytes_per_batch_row)) // step * step)
    if tb >= B:
        # Split into >=2 aligned grid steps if B allows it; otherwise one
        # full block (tiny problem).
        half = _ceil_to(max(1, (B + 1) // 2), step)
        tb = half if half < B else B
    return min(tb, B)


# ----------------------------------------------------------------------------
# Wrapper
# ----------------------------------------------------------------------------
def periodic_embedder(x: jax.Array,
                      coefficients: jax.Array,
                      *,
                      block_batch: int | None = None,
                      out_dtype=None,
                      coefficients_prescaled: bool = False) -> jax.Array:
    """Pallas TPU implementation of Periodic_Embedder.forward.

    x:            (B, F)
    coefficients: (F, N); if `coefficients_prescaled`, 2*pi is already baked in
    returns:      (B, F, 2*N) = concat([cos(2*pi*c*x), sin(2*pi*c*x)], -1)
    """
    B, F = x.shape
    Fc, N = coefficients.shape
    assert F == Fc, "coefficients must have shape (n_features, n)"
    if out_dtype is None:
        out_dtype = x.dtype
    out_itemsize = jnp.dtype(out_dtype).itemsize
    R = B * F

    sub = _packed_sublanes(out_itemsize)
    step = sub // math.gcd(sub, F)

    tb = block_batch if block_batch is not None else _pick_block_batch(
        B, F, N, out_itemsize)
    tb = max(1, min(tb, B))
    tr = tb * F                                  # rows per block
    if tb != B and tr % sub != 0:
        raise ValueError(
            f"block_batch={tb} gives TR={tr} rows, which is neither a multiple "
            f"of {sub} (packed sublanes for {jnp.dtype(out_dtype).name}) nor "
            f"the full row count {R}")

    # 2*pi folded into the tiny coefficient tensor once per call (or never, if
    # baked in at init time). Kept in f32 so the phase is computed in f32.
    coef = jnp.asarray(coefficients, jnp.float32)
    if not coefficients_prescaled:
        coef = _TWO_PI * coef

    # N % 128 == 0  -> split cos/sin stores (both lane-aligned, full-width).
    # otherwise     -> fused single-cos layout: coef2 = [2*pi*c | 2*pi*c],
    #                  bias [0 | -pi/2] built in-kernel, one 2N-wide store.
    fused = (N % 128) != 0
    if fused:
        coef = jnp.concatenate([coef, coef], axis=-1)        # (F, 2N)
    coef_w = coef.shape[1]

    # Replicate coefficients only to a small, tile-size-independent,
    # sublane-aligned row group; the kernel tiles it the rest of the way.
    if tr % sub == 0:
        l_rep = (F * 8) // math.gcd(F, 8)                    # lcm(F, 8)
    else:
        l_rep = tr                                           # tiny full-block fallback
    reps = tr // l_rep
    coef_rows = jnp.tile(coef, (l_rep // F, 1))              # (l_rep, coef_w)

    x_rows = x.reshape(R, 1)                                 # free, contiguous
    grid = (pl.cdiv(B, tb),)

    kern_fn = _periodic_kernel_fused if fused else _periodic_kernel_split
    kernel = functools.partial(kern_fn, n=N, reps=reps)

    out2d = pl.pallas_call(
        kernel,
        out_shape=jax.ShapeDtypeStruct((R, 2 * N), out_dtype),
        grid_spec=pltpu.PrefetchScalarGridSpec(
            num_scalar_prefetch=0,
            grid=grid,
            in_specs=[
                pl.BlockSpec((tr, 1), lambda i: (i, 0)),         # x rows, batch-tiled
                pl.BlockSpec((l_rep, coef_w), lambda i: (0, 0)),  # coef, resident
            ],
            out_specs=pl.BlockSpec((tr, 2 * N), lambda i: (i, 0)),
        ),
        compiler_params=pltpu.CompilerParams(
            dimension_semantics=("parallel",),                   # megacore on v7x
            vmem_limit_bytes=48 * 1024 * 1024,
        ),
        cost_estimate=pl.CostEstimate(
            flops=4 * R * N,
            transcendentals=2 * R * N,
            bytes_accessed=4 * R + 4 * l_rep * coef_w + out_itemsize * R * 2 * N,
        ),
    )(x_rows, coef_rows)

    return out2d.reshape(B, F, 2 * N)


# ----------------------------------------------------------------------------
# Parameter init + pure-JAX reference
# ----------------------------------------------------------------------------
def make_coefficients(n_features: int, n: int, sigma: float,
                      initialization: str = "log-linear",
                      key: jax.Array | None = None,
                      prescale_2pi: bool = False) -> jax.Array:
    """Parameter init mirroring Periodic.__init__ (optionally with 2*pi baked in)."""
    # TODO(synk): nn.Parameter / trainable registration is framework bookkeeping
    # with no kernel equivalent; only the forward math is implemented here.
    if initialization == "log-linear":
        coeffs = sigma ** (jnp.arange(n, dtype=jnp.float32) / n)      # (N,)
        coeffs = jnp.broadcast_to(coeffs[None, :], (n_features, n)).astype(jnp.float32)
    else:
        assert initialization == "normal"
        assert key is not None
        coeffs = sigma * jax.random.normal(key, (n_features, n), dtype=jnp.float32)
    return _TWO_PI * coeffs if prescale_2pi else coeffs


def periodic_embedder_ref(x: jax.Array, coefficients: jax.Array) -> jax.Array:
    """Pure-JAX reference (matches the PyTorch forward exactly)."""
    phase = _TWO_PI * coefficients[None, :, :] * x[:, :, None]
    return jnp.concatenate([jnp.cos(phase), jnp.sin(phase)], axis=-1)


# ----------------------------------------------------------------------------
# Demo / correctness check
# ----------------------------------------------------------------------------
if __name__ == "__main__":
    key = jax.random.PRNGKey(0)
    k_a, k_b, k_c = jax.random.split(key, 3)

    # Config A: N % 128 == 0 -> split-store path; explicit 4-step grid.
    B, F, N, sigma = 32, 8, 128, 10.0
    x_a = jax.random.normal(k_a, (B, F), dtype=jnp.float32)
    coef_a = make_coefficients(F, N, sigma, initialization="log-linear")
    out_a = jax.block_until_ready(periodic_embedder(x_a, coef_a, block_batch=8))
    ref_a = periodic_embedder_ref(x_a, coef_a)
    assert out_a.shape == (B, F, 2 * N), out_a.shape
    assert jnp.allclose(out_a, ref_a, atol=1e-5, rtol=1e-5), "config A mismatch"

    # Config B: N=64 -> fused single-cos path (one lane-dense 128-wide store),
    # default tiling (>=2 grid steps), 2*pi prescaled at init time.
    Bb, Fb, Nb, sigmab = 16, 8, 64, 0.5
    x_b = jax.random.normal(k_b, (Bb, Fb), dtype=jnp.float32)
    coef_b_raw = make_coefficients(Fb, Nb, sigmab, initialization="normal", key=k_b)
    out_b = jax.block_until_ready(
        periodic_embedder(x_b, _TWO_PI * coef_b_raw, coefficients_prescaled=True))
    ref_b = periodic_embedder_ref(x_b, coef_b_raw)
    assert out_b.shape == (Bb, Fb, 2 * Nb), out_b.shape
    assert jnp.allclose(out_b, ref_b, atol=1e-5, rtol=1e-5), "config B mismatch"

    # Config C: bf16 output fast path (f32 phase/cos, cast on store), F=4
    # exercising the 16-sublane alignment for packed dtypes.
    Bc, Fc_, Nc, sigmac = 32, 4, 64, 2.0
    x_c = jax.random.normal(k_c, (Bc, Fc_), dtype=jnp.float32)
    coef_c = make_coefficients(Fc_, Nc, sigmac, initialization="log-linear")
    out_c = jax.block_until_ready(
        periodic_embedder(x_c, coef_c, out_dtype=jnp.bfloat16))
    ref_c = periodic_embedder_ref(x_c, coef_c)
    assert out_c.shape == (Bc, Fc_, 2 * Nc), out_c.shape
    assert jnp.allclose(out_c.astype(jnp.float32), ref_c, atol=2e-2, rtol=2e-2), \
        "config C mismatch"

    print("KERNEL_OK")
</pallas_src>

<mosaic_0001>
module attributes {stable_mosaic.version = 11 : i64} {
  func.func @_periodic_kernel_split(%arg0: i32, %arg1: memref<64x1xf32, #tpu.memory_space<vmem>>, %arg2: memref<8x128xf32, #tpu.memory_space<vmem>>, %arg3: memref<64x256xf32, #tpu.memory_space<vmem>>) attributes {dimension_semantics = [#tpu.dimension_semantics<parallel>], iteration_bounds = array<i64: 4>, scalar_prefetch = 0 : i64, scratch_operands = 0 : i64, tpu.core_type = #tpu.core_type<tc>, window_params = [{transform_indices = @transform_0, window_bounds = array<i64: 64, 1>}, {pipeline_mode = #tpu.pipeline_mode<synchronous>, transform_indices = @transform_1, window_bounds = array<i64: 8, 128>}, {transform_indices = @transform_2, window_bounds = array<i64: 64, 256>}]} {
    %c0 = arith.constant 0 : index
    %c0_0 = arith.constant 0 : index
    %0 = vector.load %arg2[%c0, %c0_0] : memref<8x128xf32, #tpu.memory_space<vmem>>, vector<8x128xf32>
    %1 = tpu.concatenate %0, %0, %0, %0, %0, %0, %0, %0 in 0 : vector<8x128xf32>, vector<8x128xf32>, vector<8x128xf32>, vector<8x128xf32>, vector<8x128xf32>, vector<8x128xf32>, vector<8x128xf32>, vector<8x128xf32> -> vector<64x128xf32>
    %c0_1 = arith.constant 0 : index
    %c0_2 = arith.constant 0 : index
    %2 = vector.load %arg1[%c0_1, %c0_2] : memref<64x1xf32, #tpu.memory_space<vmem>>, vector<64x1xf32>
    %3 = vector.broadcast %2 : vector<64x1xf32> to vector<64x128xf32>
    %4 = arith.mulf %3, %1 : vector<64x128xf32>
    %5 = math.cos %4 : vector<64x128xf32>
    %c0_3 = arith.constant 0 : index
    %c0_4 = arith.constant 0 : index
    %6 = vector.load %arg3[%c0_3, %c0_4] : memref<64x256xf32, #tpu.memory_space<vmem>>, vector<64x128xf32>
    tpu.vector_store %arg3[%c0_3, %c0_4], %5 {strides = array<i32>} : memref<64x256xf32, #tpu.memory_space<vmem>>, vector<64x128xf32>,
    %7 = math.sin %4 : vector<64x128xf32>
    %c0_5 = arith.constant 0 : index
    %c128 = arith.constant 128 : index
    %8 = vector.load %arg3[%c0_5, %c128] : memref<64x256xf32, #tpu.memory_space<vmem>>, vector<64x128xf32>
    tpu.vector_store %arg3[%c0_5, %c128], %7 {strides = array<i32>} : memref<64x256xf32, #tpu.memory_space<vmem>>, vector<64x128xf32>,
    return
  }
  func.func @transform_0(%arg0: i32) -> (i32, i32) {
    %c0_i32 = arith.constant 0 : i32
    %c0_i32_0 = arith.constant 0 : i32
    return %arg0, %c0_i32 : i32, i32
  }
  func.func @transform_1(%arg0: i32) -> (i32, i32) {
    %c0_i32 = arith.constant 0 : i32
    %c0_i32_0 = arith.constant 0 : i32
    %c0_i32_1 = arith.constant 0 : i32
    return %c0_i32, %c0_i32_0 : i32, i32
  }
  func.func @transform_2(%arg0: i32) -> (i32, i32) {
    %c0_i32 = arith.constant 0 : i32
    %c0_i32_0 = arith.constant 0 : i32
    return %arg0, %c0_i32 : i32, i32
  }
}

</mosaic_0001>

<bundles_post_ra>
// kernel: tpu_custom_call.1
= control target key start
LH: loop header
LB: loop body
LE: loop exit
PB: predicated region body
PF: predicated region fallthrough
CT: control target
= control target key end

     0   :  { %7 = vsyncpa [#allocation3], 0  ;;  %s3091_s0 = inlined_call_operand.vmem [shape: f32[256,1], index: 0, kind: input, shape index: {}]   ;;  %s3092_s1 = inlined_call_operand.vmem [shape: f32[8,128], index: 1, kind: input, shape index: {}]   ;;  %s3093_s2 = inlined_call_operand.hbm [shape: f32[256,256], index: 2, kind: output, shape index: {}]  }
   0x1   :  { %9 = vsyncpa [#allocation3 + $0x1], 0  ;;  %s2232_s9 = smov 0   ;;  %s2234_s10 = smov 0  }
   0x2   :  { %s2236_s11 = smov 0   ;;  %s2238_s12 = smov 0  }
   0x3 LB: > { %s2253_s13 = sadd.s32 4294967295, %s2205_s12   ;;  %s1951_s14 = sadd.s32 4294967294, %s2205_s12   ;;  %s2205_s12 = sphi %s2238_s12, %s3113_s12   ;;  %s2201_s11 = sphi %s2236_s11, %s3112_s11   ;;  %s2197_s10 = sphi %s2234_s10, %s3111_s10   ;;  %s2193_s9 = sphi %s2232_s9, %s3110_s9  }
   0x4   : > { %s2257_s15 = sadd.s32 1, %s2205_s12   ;;  %s69_s16 = sadd.s32 1, %s2201_s11 }
   0x5   : > { %s66_s17 = ssub.s32 %s2205_s12, %s2257_s15  ;;  %p79_p0 = scmp.ne.s32.totalorder %s2201_s11, %s2197_s10 }
   0x6   : > { %p67_p1 = scmp.eq.s32.totalorder %s66_s17, 0  ;;  %p80_p2 = scmp.eq.s32.totalorder %s2253_s13, 3 }
   0x7   : > { %p85_p3 = scmp.ne.s32.totalorder %s2197_s10, %s2193_s9  ;;  %p86_p4 = scmp.eq.s32.totalorder %s1951_s14, 3 }
   0x8   : > { %s2268_s18 = scalar_select %p67_p1, %s2201_s11, %s69_s16  }
   0x9   : > { %p2270_p5 = por %p80_p2, %p79_p0  ;;  %p2274_p6 = por %p86_p4, %p85_p3 }
   0xa   : > { %p1954_p7 = scmp.ge.s32.totalorder %s2205_s12, 1  ;;  %p116_p8 = scmp.lt.s32.totalorder %s2205_s12, 5 }
   0xc   : > { %p117_p9 = pnand %p1954_p7, %p116_p8 }
   0xd   : > { %s1956_s21 = sshll.u32 (!%p117_p9), %s2253_s13, 3  ;;  %s135_s28 = sand.u32 (!%p117_p9), 1, %s2197_s10  }
   0xe   : > { %120 = sbr.rel (%p117_p9) target bundleno = 409 (0x199), region = 28  ;;  %p139_p10 = scmp.lt.s32.totalorder (!%p117_p9), %s1956_s21, 31 }
   0xf   : > { %s2562_s29 = sshll.u32 (!%p117_p9), %s135_s28, 7  ;;  %s2029_s5 = sshll.u32 (!%p117_p9), %s2253_s13, 11 }
  0x10   : > { %s2604_s30 = scalar_lea.vmem (!%p117_p9), [#allocation2], %s2562_s29  ;;  %s3042_s13 = scalar_lea.hbm (!%p117_p9), %s3093_s2, %s2029_s5 }
  0x11   : > { %s1889_s6 = sshll.u32 (!%p117_p9), %s2604_s30, 4  ;;  %s3051_s14 = scalar_lea.sflag (!%p117_p9), [#allocation3], %s135_s28  ;;  %s3044_s6 = int_to_ptr.vmem [resolvable:$true] %s1889_s6 }
  0x12   : > { %s2145_s16 = scalar_lea.vmem (!%p117_p9), %s3044_s6, 2048  ;;  %s2214_s17 = smov (!%p117_p9), [#allocation2]  }
  0x13   : > { %v2207_v0 = vmov 0   ;;  %s3115_s21 = smov (!%p139_p10, %s1956_s21), 31  ;;  %v2287_v9 = vld [vmem:[%s3092_s1] sm:$0xff]  ;;  %v2208_v44 = vmov 683565275   ;;  %p2146_p11 = scmp.ne.s32.totalorder %s3044_s6, %s2145_s16 }
  0x14   : > { %2111 = vset.pattern.permute.xlu1 %v2207_v0  ;;  %2110 = vset.pattern.permute.xlu0 %v2207_v0  ;;  %s1957_s22 = sshll.u32 %s3115_s21, 3  ;;  %v2209_v48 = vmov 2475754826   ;;  %v2210_v50 = vmov 2131351028   ;;  %s2149_s21 = sshll.u32 %s2214_s17, 4  ;;  %s2150_s21 = int_to_ptr.vmem [resolvable:$false] %s2149_s21 }
  0x15   : > { %s142_s25 = scalar_lea.vmem %s3091_s0, %s1957_s22  ;;  %v2211_v52 = vmov 2102212464   ;;  %v2212_v54 = vmov 920167782   ;;  %v2213_v61 = vmov 1326507024   ;;  %p2147_p12 = pnand %p2146_p11, %p2270_p5 }
  0x16   : > { %v148_v1 = vld [vmem:[%s142_s25 + $0x10] sm:$0xff]  ;;  %v146_v2 = vld [vmem:[%s142_s25] sm:$0xff]  ;;  %v149_v3 = vld [vmem:[%s142_s25 + $0x18] sm:$0xff]  ;;  %s2151_s22 = scalar_lea.vmem %s2150_s21, 4096  ;;  %p2152_p0 = scmp.lt.s32.totalorder %s3044_s6, %s2150_s21 }
  0x17   : > { %166 = vperm.xlu1 %2111, %v148_v1   ;;  %156 = vperm.xlu0 %2110, %v146_v2   ;;  %v147_v4 = vld [vmem:[%s142_s25 + $0x8] sm:$0xff]  ;;  %v150_v6 = vld [vmem:[%s142_s25 + $0x20] sm:$0xff]  ;;  %v153_v7 = vld [vmem:[%s142_s25 + $0x38] sm:$0xff]  ;;  %p2148_p13 = pneg %p2147_p12  ;;  %p2153_p1 = scmp.lt.s32.totalorder %s2151_s22, %s2145_s16 }
  0x18   : > { %v151_v5 = vld [vmem:[%s142_s25 + $0x28] sm:$0xff]  ;;  %v152_v8 = vld [vmem:[%s142_s25 + $0x30] sm:$0xff] }
  0x19   : > { %p2154_p2 = por %p2153_p1, %p2152_p0 }
  0x1b   : > { %171 = vperm.xlu1 %2111, %v149_v3   ;;  %161 = vperm.xlu0 %2110, %v147_v4   ;;  %p2155_p3 = pnand %p2154_p2, %p2148_p13 }
  0x1f   : > { %181 = vperm.xlu1 %2111, %v151_v5   ;;  %176 = vperm.xlu0 %2110, %v150_v6  }
  0x23   : > { %191 = vperm.xlu1 %2111, %v153_v7   ;;  %186 = vperm.xlu0 %2110, %v152_v8  }
  0x92   : > { %v167_v10 = vpop.permute.xlu1 %166  ;;  %v157_v11 = vpop.permute.xlu0 %156 }
  0x93   : > { %v2290_v12 = vmul.f32 %v167_v10, %v2287_v9  ;;  %v2293_v13 = vmul.f32 %v157_v11, %v2287_v9 }
  0x95   : > { %v408_v14 = vand.u32 2147483647, %v2290_v12  ;;  %v411_v15 = vand.u32 2139095040, %v2290_v12  ;;  %v202_v16 = vand.u32 2147483647, %v2293_v13  ;;  %v205_v17 = vand.u32 2139095040, %v2293_v13 }
  0x96   : > { %v172_v18 = vpop.permute.xlu1 %171  ;;  %v162_v32 = vpop.permute.xlu0 %161  ;;  %vm410_vm14 = vcmp.lt.s32.totalorder %v2290_v12, 0 }
  0x97   : > { %v412_v19 = vshrl.u32 %v411_v15, 23  ;;  %v2300_v20 = vmul.f32 %v172_v18, %v2287_v9  ;;  %v415_v21 = vand.u32 8388607, %v408_v14  ;;  %v206_v22 = vshrl.u32 %v205_v17, 23 }
  0x98   : > { %v209_v23 = vand.u32 8388607, %v202_v16  ;;  %v2308_v38 = vmul.f32 %v162_v32, %v2287_v9  ;;  %vm2391_vm13 = vcmp.le.f32.partialorder %v408_v14, 0.7853982 }
  0x99   : > { %v1966_v24 = vadd.s32 4294967169, %v412_v19  ;;  %v1958_v25 = vadd.s32 4294967169, %v206_v22  ;;  %v514_v26 = vand.u32 2139095040, %v2300_v20  ;;  %v416_v28 = vor.u32 8388608, %v415_v21 }
  0x9a   : > { %v210_v29 = vor.u32 8388608, %v209_v23  ;;  %v511_v42 = vand.u32 2147483647, %v2300_v20 }
  0x9b   : > { %v418_v27 = vadd.s32 1, %v1966_v24  ;;  %v212_v30 = vadd.s32 1, %v1958_v25  ;;  %v515_v31 = vshrl.u32 %v514_v26, 23  ;;  %v2310_v39 = vshll.u32 %v416_v28, 8 }
  0x9c   : > { %v2314_v41 = vshll.u32 %v210_v29, 8 }
  0x9d   : > { %vm419_vm0 = vcmp.gt.s32.totalorder %v418_v27, 0  ;;  %vm213_vm1 = vcmp.gt.s32.totalorder %v212_v30, 0  ;;  %v1970_v34 = vadd.s32 4294967169, %v515_v31 }
  0x9e   : > { %v420_v33 = vsel %vm419_vm0, %v418_v27, 0  ;;  %v214_v37 = vsel %vm213_vm1, %v212_v30, 0  ;;  %vm204_vm0 = vcmp.lt.s32.totalorder %v2293_v13, 0 }
  0x9f   : > { %v421_v35 = vshrl.u32 %v420_v33, 5  ;;  %v422_v36 = vand.u32 31, %v420_v33  ;;  %v2312_v40 = vshrl.u32 %v214_v37, 5  ;;  %v216_v46 = vand.u32 31, %v214_v37 }
  0xa0   : > { %v2318_v47 = vadd.s32 1, %v1970_v34 }
  0xa1   : > { %v423_v43 = vsub.s32 32, %v422_v36  ;;  %v425_v45 = vshll.u32 %v2208_v44, %v422_v36  ;;  %v428_v49 = vshll.u32 %v2209_v48, %v422_v36  ;;  %v431_v51 = vshll.u32 %v2210_v50, %v422_v36 }
  0xa2   : > { %v434_v53 = vshll.u32 %v2211_v52, %v422_v36  ;;  %v437_v55 = vshll.u32 %v2212_v54, %v422_v36  ;;  %vm440_vm2 = vcmp.lt.s32.totalorder %v421_v35, 1  ;;  %vm441_vm3 = vcmp.lt.s32.totalorder %v421_v35, 2 }
  0xa3   : > { %v426_v56 = vshrl.u32 %v2209_v48, %v423_v43  ;;  %v429_v57 = vshrl.u32 %v2210_v50, %v423_v43  ;;  %v432_v58 = vshrl.u32 %v2211_v52, %v423_v43  ;;  %v424_v59 = vshrl.u32 %v2208_v44, %v423_v43 }
  0xa4   : > { %v435_v60 = vshrl.u32 %v2212_v54, %v423_v43  ;;  %v438_v62 = vshrl.u32 %v2213_v61, %v423_v43  ;;  %v217_v2 = vsub.s32 32, %v216_v46  ;;  %vm442_vm4 = vcmp.lt.s32.totalorder %v421_v35, 3 }
  0xa5   : > { %v427_v63 = vor.u32 %v426_v56, %v425_v45  ;;  %v430_v0 = vor.u32 %v429_v57, %v428_v49  ;;  %v433_v1 = vor.u32 %v432_v58, %v431_v51  ;;  %vm443_vm5 = vcmp.lt.s32.totalorder %v421_v35, 4 }
  0xa6   : > { %v436_v3 = vor.u32 %v435_v60, %v434_v53  ;;  %v439_v4 = vor.u32 %v438_v62, %v437_v55  ;;  %v219_v17 = vshll.u32 %v2208_v44, %v216_v46  ;;  %v220_v21 = vshrl.u32 %v2209_v48, %v217_v2 }
  0xa7   : > { %v444_v5 = vsel %vm440_vm2, %v424_v59, %v427_v63  ;;  %v445_v6 = vsel %vm443_vm5, %v433_v1, 2102212464  ;;  %v448_v7 = vsel %vm440_vm2, %v427_v63, %v430_v0  ;;  %v452_v8 = vsel %vm440_vm2, %v430_v0, %v433_v1 }
  0xa8   : > { %v446_v10 = vsel %vm442_vm4, %v430_v0, %v445_v6  ;;  %v449_v11 = vsel %vm443_vm5, %v436_v3, 920167782  ;;  %v453_v15 = vsel %vm443_vm5, %v439_v4, 1326507024  ;;  %v222_v22 = vshll.u32 %v2209_v48, %v216_v46 }
  0xa9   : > { %v450_v18 = vsel %vm442_vm4, %v433_v1, %v449_v11  ;;  %v454_v19 = vsel %vm442_vm4, %v436_v3, %v453_v15  ;;  %v447_v23 = vsel %vm441_vm3, %v444_v5, %v446_v10  ;;  %v223_v26 = vshrl.u32 %v2210_v50, %v217_v2 }
  0xaa   : > { %v451_v24 = vsel %vm441_vm3, %v448_v7, %v450_v18  ;;  %v455_v25 = vsel %vm441_vm3, %v452_v8, %v454_v19  ;;  %v221_v31 = vor.u32 %v220_v21, %v219_v17  ;;  %v225_v33 = vshll.u32 %v2210_v50, %v216_v46 }
  0xab   : > { %v2341_v27 = vmul.u32.u64.low %v2310_v39, %v455_v25  ;;  %v2342_v28 = vmul.u32.u64.high %v2310_v39, %v455_v25, %v2341_v27  ;;  %v2345_v29 = vmul.u32.u64.low %v2310_v39, %v451_v24  ;;  %v2346_v30 = vmul.u32.u64.high %v2310_v39, %v451_v24, %v2345_v29 }
  0xac   : > { %v224_v32 = vor.u32 %v223_v26, %v222_v22  ;;  %v226_v34 = vshrl.u32 %v2211_v52, %v217_v2  ;;  %v218_v35 = vshrl.u32 %v2208_v44, %v217_v2  ;;  %v228_v36 = vshll.u32 %v2211_v52, %v216_v46 }
  0xad   : > { %v229_v37 = vshrl.u32 %v2212_v54, %v217_v2  ;;  %v232_v43 = vshrl.u32 %v2213_v61, %v217_v2  ;;  %v463_v45 = vmul.u32 %v2310_v39, %v447_v23  ;;  %v231_v51 = vshll.u32 %v2212_v54, %v216_v46 }
  0xae   : > { %v227_v49 = vor.u32 %v226_v34, %v225_v33  ;;  %vm234_vm6 = vcmp.lt.s32.totalorder %v2312_v40, 1  ;;  %vm465_vm7 = vc.u32 %v2342_v28, %v2345_v29  ;;  %v466_v53 = vadd.s32 1, %v2346_v30 }
  0xaf   : > { %v230_v55 = vor.u32 %v229_v37, %v228_v36  ;;  %vm235_vm8 = vcmp.lt.s32.totalorder %v2312_v40, 2  ;;  %v233_v56 = vor.u32 %v232_v43, %v231_v51  ;;  %vm236_vm9 = vcmp.lt.s32.totalorder %v2312_v40, 3 }
  0xb0   : > { %vm237_vm10 = vcmp.lt.s32.totalorder %v2312_v40, 4  ;;  %v242_v57 = vsel %vm234_vm6, %v221_v31, %v224_v32  ;;  %v467_v39 = vsel %vm465_vm7, %v466_v53, %v2346_v30  ;;  %v246_v59 = vsel %vm234_vm6, %v224_v32, %v227_v49 }
  0xb1   : > { %v239_v58 = vsel %vm237_vm10, %v227_v49, 2102212464  ;;  %v243_v46 = vsel %vm237_vm10, %v230_v55, 920167782  ;;  %v468_v60 = vadd.s32 %v467_v39, %v463_v45  ;;  %v238_v62 = vsel %vm234_vm6, %v218_v35, %v221_v31 }
  0xb2   : > { %v244_v63 = vsel %vm236_vm9, %v227_v49, %v243_v46  ;;  %v247_v0 = vsel %vm237_vm10, %v233_v56, 1326507024  ;;  %v240_v1 = vsel %vm236_vm9, %v224_v32, %v239_v58  ;;  %vm522_vm11 = vcmp.gt.s32.totalorder %v2318_v47, 0 }
  0xb3   : > { %v245_v2 = vsel %vm235_vm8, %v242_v57, %v244_v63  ;;  %v248_v3 = vsel %vm236_vm9, %v230_v55, %v247_v0  ;;  %v469_v4 = vadd.s32 536870912, %v468_v60  ;;  %v241_v15 = vsel %vm235_vm8, %v238_v62, %v240_v1 }
  0xb4   : > { %v249_v5 = vsel %vm235_vm8, %v246_v59, %v248_v3  ;;  %v2371_v6 = vmul.u32.u64.low %v2314_v41, %v245_v2  ;;  %v2372_v7 = vmul.u32.u64.high %v2314_v41, %v245_v2, %v2371_v6  ;;  %v518_v17 = vand.u32 8388607, %v511_v42 }
  0xb5   : > { %v2375_v8 = vmul.u32.u64.low %v2314_v41, %v249_v5  ;;  %v2376_v10 = vmul.u32.u64.high %v2314_v41, %v249_v5, %v2375_v8  ;;  %v470_v11 = vshrl.u32 %v469_v4, 30  ;;  %v523_v18 = vsel %vm522_vm11, %v2318_v47, 0 }
  0xb6   : > { %v260_v21 = vadd.s32 1, %v2372_v7  ;;  %v308_v22 = vand.u32 2139095040, %v2308_v38  ;;  %v257_v23 = vmul.u32 %v2314_v41, %v241_v15  ;;  %v525_v26 = vand.u32 31, %v523_v18 }
  0xb7   : > { %v471_v19 = vshll.u32 %v470_v11, 30  ;;  %vm259_vm12 = vc.u32 %v2376_v10, %v2371_v6  ;;  %v519_v27 = vor.u32 8388608, %v518_v17  ;;  %v305_v47 = vand.u32 2147483647, %v2308_v38 }
  0xb8   : > { %v261_v25 = vsel %vm259_vm12, %v260_v21, %v2372_v7  ;;  %v309_v31 = vshrl.u32 %v308_v22, 23  ;;  %v494_v34 = vsub.s32 4, %v470_v11  ;;  %v526_v35 = vsub.s32 32, %v525_v26 }
  0xb9   : > { %v472_v24 = vsub.s32 %v468_v60, %v471_v19  ;;  %v262_v40 = vadd.s32 %v261_v25, %v257_v23  ;;  %v2398_v37 = vshll.u32 %v519_v27, 8  ;;  %v464_v43 = vadd.s32 %v2345_v29, %v2342_v28 }
  0xba   : > { %v2402_v49 = vshrl.u32 %v523_v18, 5  ;;  %v2404_v51 = vadd.s32 4294967169, %v309_v31  ;;  %v2407_v53 = vadd.s32 %v2371_v6, %v2376_v10  ;;  %v528_v55 = vshll.u32 %v2208_v44, %v525_v26 }
  0xbb   : > { %v474_v30 = vsub.s32 0, %v472_v24  ;;  %v263_v32 = vadd.s32 536870912, %v262_v40  ;;  %v2413_v56 = vand.u32 8388607, %v305_v47  ;;  %v495_v28 = vsel %vm410_vm14, %v494_v34, %v470_v11 }
  0xbc   : > { %v531_v29 = vshll.u32 %v2209_v48, %v525_v26  ;;  %v538_v39 = vshrl.u32 %v2212_v54, %v526_v35  ;;  %v529_v46 = vshrl.u32 %v2209_v48, %v526_v35  ;;  %v532_v59 = vshrl.u32 %v2210_v50, %v526_v35 }
  0xbd   : > { %v1967_v33 = vmin.u32 %v474_v30, %v472_v24  ;;  %v2396_v36 = vshrl.u32 %v263_v32, 30  ;;  %v535_v60 = vshrl.u32 %v2211_v52, %v526_v35  ;;  %v527_v62 = vshrl.u32 %v2208_v44, %v526_v35 }
  0xbe   : > { %v537_v63 = vshll.u32 %v2211_v52, %v525_v26  ;;  %v541_v0 = vshrl.u32 %v2213_v61, %v526_v35  ;;  %v2429_v2 = vsel %vm2391_vm13, 0, %v495_v28  ;;  %v534_v4 = vshll.u32 %v2210_v50, %v525_v26 }
  0xbf   : > { %v476_v45 = vclz %v1967_v33  ;;  %v265_v14 = vshll.u32 %v2396_v36, 30  ;;  %v540_v8 = vshll.u32 %v2212_v54, %v525_v26  ;;  %v530_v11 = vor.u32 %v529_v46, %v528_v55 }
  0xc0   : > { %v539_v7 = vor.u32 %v538_v39, %v537_v63  ;;  %v533_v15 = vor.u32 %v532_v59, %v531_v29  ;;  %v536_v17 = vor.u32 %v535_v60, %v534_v4  ;;  %v288_v25 = vsub.s32 4, %v2396_v36 }
  0xc1   : > { %v1968_v57 = vadd.s32 4294967294, %v476_v45  ;;  %v2419_v58 = vsub.s32 %v262_v40, %v265_v14  ;;  %v542_v22 = vor.u32 %v541_v0, %v540_v8  ;;  %vm543_vm1 = vcmp.lt.s32.totalorder %v2402_v49, 1 }
  0xc2   : > { %vm546_vm2 = vcmp.lt.s32.totalorder %v2402_v49, 4  ;;  %vm544_vm3 = vcmp.lt.s32.totalorder %v2402_v49, 2  ;;  %vm545_vm4 = vcmp.lt.s32.totalorder %v2402_v49, 3  ;;  %v555_v31 = vsel %vm543_vm1, %v533_v15, %v536_v17 }
  0xc3   : > { %vm1969_vm15 = vcmp.lt.s32.totalorder %v1968_v57, 0  ;;  %v268_v3 = vsub.s32 0, %v2419_v58  ;;  %v552_v27 = vsel %vm546_vm2, %v539_v7, 920167782  ;;  %vm2447_vm5 = vcmp.le.f32.partialorder %v202_v16, 0.7853982 }
  0xc4   : > { %v479_v1 = vsel %vm1969_vm15, 0, %v1968_v57  ;;  %v548_v34 = vsel %vm546_vm2, %v536_v17, 2102212464  ;;  %v553_v35 = vsel %vm545_vm4, %v536_v17, %v552_v27  ;;  %v547_v14 = vsel %vm543_vm1, %v527_v62, %v530_v11 }
  0xc5   : > { %v480_v5 = vsub.s32 32, %v479_v1  ;;  %v484_v6 = vsub.s32 4294967266, %v479_v1  ;;  %v1959_v10 = vmin.u32 %v268_v3, %v2419_v58  ;;  %v481_v18 = vshll.u32 %v472_v24, %v479_v1 }
  0xc6   : > { %v551_v24 = vsel %vm543_vm1, %v530_v11, %v533_v15  ;;  %v549_v59 = vsel %vm545_vm4, %v533_v15, %v548_v34  ;;  %v315_v60 = vadd.s32 1, %v2404_v51  ;;  %v289_v51 = vsel %vm204_vm0, %v288_v25, %v2396_v36 }
  0xc7   : > { %v482_v19 = vshrl.u32 %v464_v43, %v480_v5  ;;  %v485_v21 = vadd.s32 127, %v484_v6  ;;  %v270_v23 = vclz %v1959_v10  ;;  %v556_v43 = vsel %vm546_vm2, %v542_v22, 1326507024 }
  0xc8   : > { %v557_v55 = vsel %vm545_vm4, %v539_v7, %v556_v43  ;;  %v554_v16 = vsel %vm544_vm3, %v551_v24, %v553_v35  ;;  %v182_v7 = vpop.permute.xlu1 %181  ;;  %v1335_v10 = vadd.s32 3, %v2429_v2  ;;  %vm316_vm7 = vcmp.gt.s32.totalorder %v315_v60, 0 }
  0xc9   : > { %v483_v40 = vor.u32 %v482_v19, %v481_v18  ;;  %v486_v26 = vshll.u32 %v485_v21, 23  ;;  %v1960_v30 = vadd.s32 4294967294, %v270_v23  ;;  %v558_v29 = vsel %vm544_vm3, %v555_v31, %v557_v55 }
  0xca   : > { %v2466_v0 = vmul.u32.u64.low %v2398_v37, %v558_v29  ;;  %v2467_v1 = vmul.u32.u64.high %v2398_v37, %v558_v29, %v2466_v0  ;;  %v2471_v5 = vmul.u32.u64.low %v2398_v37, %v554_v16  ;;  %v2472_v6 = vmul.u32.u64.high %v2398_v37, %v554_v16, %v2471_v5 }
  0xcb   : > { %v487_v32 = vor.u32 4788187, %v486_v26  ;;  %v490_v45 = vcvt.s32.f32 %v483_v40  ;;  %vm1961_vm6 = vcmp.lt.s32.totalorder %v1960_v30, 0  ;;  %v317_v15 = vsel %vm316_vm7, %v315_v60, 0 }
  0xcc   : > { %v273_v28 = vsel %vm1961_vm6, 0, %v1960_v30  ;;  %v2484_v18 = vand.u32 3, %v2429_v2  ;;  %vm568_vm8 = vc.u32 %v2467_v1, %v2471_v5  ;;  %v2489_v19 = vmul.f32 %v182_v7, %v2287_v9 }
  0xcd   : > { %v488_v57 = vand.u32 2147483647, %v487_v32  ;;  %v274_v39 = vsub.s32 32, %v273_v28  ;;  %v278_v46 = vsub.s32 4294967266, %v273_v28  ;;  %v275_v62 = vshll.u32 %v2419_v58, %v273_v28 }
  0xce   : > { %v291_v49 = vsel %vm2447_vm5, 0, %v289_v51  ;;  %v569_v22 = vadd.s32 1, %v2472_v6  ;;  %v2497_v23 = vand.u32 3, %v1335_v10  ;;  %v319_v25 = vand.u32 31, %v317_v15 }
  0xcf   : > { %v491_v63 = vmul.f32 %v490_v45, %v488_v57  ;;  %v276_v3 = vshrl.u32 %v2407_v53, %v274_v39  ;;  %v279_v4 = vadd.s32 127, %v278_v46  ;;  %v550_v53 = vsel %vm544_vm3, %v547_v14, %v549_v59 }
  0xd0   : > { %v566_v2 = vmul.u32 %v2398_v37, %v550_v53  ;;  %v570_v27 = vsel %vm568_vm8, %v569_v22, %v2472_v6  ;;  %v1127_v30 = vadd.s32 3, %v291_v49  ;;  %v2501_v24 = vshrl.u32 %v317_v15, 5 }
  0xd1   : > { %v492_v8 = vxor.u32 2147483648, %v491_v63  ;;  %v277_v58 = vor.u32 %v276_v3, %v275_v62  ;;  %v280_v11 = vshll.u32 %v279_v4, 23  ;;  %v320_v31 = vsub.s32 32, %v319_v25 }
  0xd2   : > { %v571_v41 = vadd.s32 %v570_v27, %v566_v2  ;;  %v322_v34 = vshll.u32 %v2208_v44, %v319_v25  ;;  %v325_v35 = vshll.u32 %v2209_v48, %v319_v25  ;;  %v328_v43 = vshll.u32 %v2210_v50, %v319_v25 }
  0xd3   : > { %v493_v17 = vsel %vm410_vm14, %v492_v8, %v491_v63  ;;  %v281_v21 = vor.u32 4788187, %v280_v11  ;;  %v284_v26 = vcvt.s32.f32 %v277_v58  ;;  %v323_v37 = vshrl.u32 %v2209_v48, %v320_v31 }
  0xd4   : > { %v496_v36 = vsel %vm2391_vm13, %v2290_v12, %v493_v17  ;;  %v572_v45 = vadd.s32 536870912, %v571_v41  ;;  %v326_v14 = vshrl.u32 %v2210_v50, %v320_v31  ;;  %v331_v55 = vshll.u32 %v2211_v52, %v319_v25 }
  0xd5   : > { %2112 = vcosq.f32 %v496_v36  ;;  %v282_v40 = vand.u32 2147483647, %v281_v21  ;;  %v329_v28 = vshrl.u32 %v2211_v52, %v320_v31  ;;  %v332_v16 = vshrl.u32 %v2212_v54, %v320_v31 }
  0xd6   : > { %2114 = vsinq.f32 %v496_v36  ;;  %v335_v29 = vshrl.u32 %v2213_v61, %v320_v31  ;;  %v2512_v39 = vshrl.u32 %v572_v45, 30  ;;  %v313_v46 = vor.u32 8388608, %v2413_v56 }
  0xd7   : > { %v285_v32 = vmul.f32 %v284_v26, %v282_v40  ;;  %v324_v59 = vor.u32 %v323_v37, %v322_v34  ;;  %v327_v60 = vor.u32 %v326_v14, %v325_v35  ;;  %vm506_vm9 = vcmp.eq.s32.totalorder %v2484_v18, 2 }
  0xd8   : > { %v330_v62 = vor.u32 %v329_v28, %v328_v43  ;;  %v333_v0 = vor.u32 %v332_v16, %v331_v55  ;;  %v334_v3 = vshll.u32 %v2212_v54, %v319_v25  ;;  %vm503_vm10 = vcmp.eq.s32.totalorder %v2484_v18, 0 }
  0xd9   : > { %v286_v57 = vxor.u32 2147483648, %v285_v32  ;;  %v574_v56 = vshll.u32 %v2512_v39, 30  ;;  %vm337_vm11 = vcmp.lt.s32.totalorder %v2501_v24, 1  ;;  %vm340_vm12 = vcmp.lt.s32.totalorder %v2501_v24, 4 }
  0xda   : > { %vm502_vm13 = vcmp.lt.s32.totalorder %v2484_v18, 2  ;;  %v336_v6 = vor.u32 %v335_v29, %v334_v3  ;;  %v345_v7 = vsel %vm337_vm11, %v324_v59, %v327_v60  ;;  %v346_v8 = vsel %vm340_vm12, %v333_v0, 920167782 }
  0xdb   : > { %v287_v63 = vsel %vm204_vm0, %v286_v57, %v285_v32  ;;  %vm500_vm14 = vweird.f32 %v2290_v12  ;;  %vm1337_vm15 = vcmp.lt.s32.totalorder %v2497_v23, 2  ;;  %v2533_v33 = vsub.s32 %v571_v41, %v574_v56 }
  0xdc   : > { %v290_v4 = vsel %vm2447_vm5, %v2293_v13, %v287_v63  ;;  %vm339_vm0 = vcmp.lt.s32.totalorder %v2501_v24, 3  ;;  %vm1338_vm1 = vcmp.eq.s32.totalorder %v2497_v23, 0  ;;  %vm338_vm2 = vcmp.lt.s32.totalorder %v2501_v24, 2 }
  0xdd   : > { %2116 = vcosq.f32 %v290_v4  ;;  %v347_v10 = vsel %vm339_vm0, %v330_v62, %v346_v8  ;;  %v2541_v51 = vshll.u32 %v313_v46, 8  ;;  %v2543_v58 = vand.u32 3, %v291_v49 }
  0xde   : > { %2118 = vsinq.f32 %v290_v4  ;;  %v2545_v11 = vand.u32 3, %v1127_v30  ;;  %v577_v53 = vsub.s32 0, %v2533_v33  ;;  %v348_v15 = vsel %vm338_vm2, %v345_v7, %v347_v10 }
  0xdf   : > { %vm513_vm3 = vcmp.lt.s32.totalorder %v2300_v20, 0  ;;  %v349_v36 = vsel %vm337_vm11, %v327_v60, %v330_v62  ;;  %v350_v21 = vsel %vm340_vm12, %v336_v6, 1326507024  ;;  %vm1341_vm4 = vcmp.eq.s32.totalorder %v2497_v23, 2 }
  0xe0   : > { %v2556_v22 = vmul.u32.u64.low %v2541_v51, %v348_v15  ;;  %v2557_v49 = vmul.u32.u64.high %v2541_v51, %v348_v15, %v2556_v22  ;;  %v1971_v40 = vmin.u32 %v577_v53, %v2533_v33  ;;  %v342_v26 = vsel %vm340_vm12, %v330_v62, 2102212464 }
  0xe1   : > { %v321_v30 = vshrl.u32 %v2208_v44, %v320_v31  ;;  %v351_v41 = vsel %vm339_vm0, %v333_v0, %v350_v21  ;;  %v720_v32 = vand.u32 2139095040, %v2489_v19  ;;  %vm300_vm5 = vcmp.eq.s32.totalorder %v2543_v58, 2 }
  0xe2   : > { %v2113_v17 = vpop.eup %2112  ;;  %v579_v43 = vclz %v1971_v40  ;;  %v352_v45 = vsel %vm338_vm2, %v349_v36, %v351_v41  ;;  %vm297_vm6 = vcmp.eq.s32.totalorder %v2543_v58, 0  ;;  %vm1130_vm7 = vcmp.eq.s32.totalorder %v2545_v11, 0 }
  0xe3   : > { %v2115_v2 = vpop.eup %2114  ;;  %v507_v25 = vxor.u32 2147483648, %v2113_v17  ;;  %v341_v14 = vsel %vm337_vm11, %v321_v30, %v324_v59  ;;  %v343_v55 = vsel %vm339_vm0, %v327_v60, %v342_v26  ;;  %vm296_vm8 = vcmp.lt.s32.totalorder %v2543_v58, 2 }
  0xe4   : > { %v504_v27 = vxor.u32 2147483648, %v2115_v2  ;;  %v1972_v16 = vadd.s32 4294967294, %v579_v43  ;;  %v597_v29 = vsub.s32 4, %v2512_v39  ;;  %v344_v23 = vsel %vm338_vm2, %v341_v14, %v343_v55  ;;  %v177_v14 = vpop.permute.xlu0 %176 }
  0xe5   : > { %v508_v34 = vsel %vm506_vm9, %v507_v25, %v2115_v2  ;;  %v1343_v35 = vsel %vm1341_vm4, %v507_v25, %v2115_v2  ;;  %vm1129_vm9 = vcmp.lt.s32.totalorder %v2545_v11, 2  ;;  %v363_v63 = vadd.s32 1, %v2557_v49 }
  0xe6   : > { %v505_v37 = vsel %vm503_vm10, %v2113_v17, %v504_v27  ;;  %v1340_v31 = vsel %vm1338_vm1, %v2113_v17, %v504_v27  ;;  %vm294_vm10 = vweird.f32 %v2293_v13  ;;  %vm1973_vm11 = vcmp.lt.s32.totalorder %v1972_v16, 0 }
  0xe7   : > { %v509_v57 = vsel %vm502_vm13, %v505_v37, %v508_v34  ;;  %v1344_v28 = vsel %vm1337_vm15, %v1340_v31, %v1343_v35  ;;  %v2600_v18 = vmul.u32.u64.low %v2541_v51, %v352_v45  ;;  %v2601_v60 = vmul.u32.u64.high %v2541_v51, %v352_v45, %v2600_v18 }
  0xe8   : > { %v510_v46 = vsel %vm500_vm14, nan, %v509_v57  ;;  %v1345_v59 = vsel %vm500_vm14, nan, %v1344_v28  ;;  %v721_v12 = vshrl.u32 %v720_v32, 23  ;;  %vm1133_vm12 = vcmp.eq.s32.totalorder %v2545_v11, 2 }
  0xe9   : > { %1028 = vst [vmem:[%s2604_s30 + $0x20] sm:$0xff] %v510_v46  ;;  %1868 = vst [vmem:[%s2604_s30 + $0x28] sm:$0xff] %v1345_v59  ;;  %v567_v62 = vadd.s32 %v2471_v5, %v2467_v1  ;;  %v582_v0 = vsel %vm1973_vm11, 0, %v1972_v16  ;;  %v717_v3 = vand.u32 2147483647, %v2489_v19  ;;  %v598_v7 = vsel %vm513_vm3, %v597_v29, %v2512_v39 }
  0xea   : > { %v2117_v4 = vpop.eup %2116  ;;  %v583_v56 = vsub.s32 32, %v582_v0  ;;  %v587_v6 = vsub.s32 4294967266, %v582_v0  ;;  %v1978_v24 = vadd.s32 4294967169, %v721_v12  ;;  %v584_v53 = vshll.u32 %v2533_v33, %v582_v0 }
  0xeb   : > { %v2119_v8 = vpop.eup %2118  ;;  %v301_v10 = vxor.u32 2147483648, %v2117_v4  ;;  %v360_v15 = vmul.u32 %v2541_v51, %v344_v23  ;;  %vm362_vm13 = vc.u32 %v2601_v60, %v2556_v22  ;;  %vm2641_vm15 = vcmp.le.f32.partialorder %v511_v42, 0.7853982 }
  0xec   : > { %v298_v1 = vxor.u32 2147483648, %v2119_v8  ;;  %v585_v5 = vshrl.u32 %v567_v62, %v583_v56  ;;  %v588_v17 = vadd.s32 127, %v587_v6  ;;  %v364_v36 = vsel %vm362_vm13, %v363_v63, %v2557_v49 }
  0xed   : > { %v302_v21 = vsel %vm300_vm5, %v301_v10, %v2119_v8  ;;  %v1135_v39 = vsel %vm1133_vm12, %v301_v10, %v2119_v8  ;;  %v365_v2 = vadd.s32 %v364_v36, %v360_v15  ;;  %v727_v33 = vadd.s32 1, %v1978_v24 }
  0xee   : > { %v299_v51 = vsel %vm297_vm6, %v2117_v4, %v298_v1  ;;  %v1132_v25 = vsel %vm1130_vm7, %v2117_v4, %v298_v1  ;;  %v586_v40 = vor.u32 %v585_v5, %v584_v53  ;;  %v589_v26 = vshll.u32 %v588_v17, 23 }
  0xef   : > { %v303_v49 = vsel %vm296_vm8, %v299_v51, %v302_v21  ;;  %v1136_v27 = vsel %vm1129_vm9, %v1132_v25, %v1135_v39  ;;  %v366_v30 = vadd.s32 536870912, %v365_v2  ;;  %vm728_vm14 = vcmp.gt.s32.totalorder %v727_v33, 0 }
  0xf0   : > { %v304_v41 = vsel %vm294_vm10, nan, %v303_v49  ;;  %v1137_v32 = vsel %vm294_vm10, nan, %v1136_v27  ;;  %v590_v35 = vor.u32 4788187, %v589_v26  ;;  %v600_v58 = vsel %vm2641_vm15, 0, %v598_v7 }
  0xf1   : > { %1026 = vst [vmem:[%s2604_s30] sm:$0xff] %v304_v41  ;;  %1866 = vst [vmem:[%s2604_s30 + $0x8] sm:$0xff] %v1137_v32  ;;  %v2649_v11 = vshrl.u32 %v366_v30, 30  ;;  %v729_v43 = vsel %vm728_vm14, %v727_v33, 0  ;;  %v593_v37 = vcvt.s32.f32 %v586_v40  ;;  %v724_v13 = vand.u32 8388607, %v717_v3 }
  0xf2   : > { %v591_v45 = vand.u32 2147483647, %v590_v35  ;;  %v731_v31 = vand.u32 31, %v729_v43  ;;  %v2654_v28 = vand.u32 3, %v600_v58  ;;  %v2659_v29 = vmul.f32 %v177_v14, %v2287_v9 }
  0xf3   : > { %v368_v42 = vshll.u32 %v2649_v11, 30  ;;  %v1439_v59 = vadd.s32 3, %v600_v58  ;;  %v725_v18 = vor.u32 8388608, %v724_v13  ;;  %v730_v12 = vshrl.u32 %v729_v43, 5 }
  0xf4   : > { %v594_v55 = vmul.f32 %v593_v37, %v591_v45  ;;  %v732_v57 = vsub.s32 32, %v731_v31  ;;  %v734_v62 = vshll.u32 %v2208_v44, %v731_v31  ;;  %v737_v56 = vshll.u32 %v2209_v48, %v731_v31 }
  0xf5   : > { %v2656_v16 = vsub.s32 %v365_v2, %v368_v42  ;;  %v740_v8 = vshll.u32 %v2210_v50, %v731_v31  ;;  %v743_v10 = vshll.u32 %v2211_v52, %v731_v31  ;;  %v2676_v53 = vand.u32 3, %v1439_v59 }
  0xf6   : > { %v595_v46 = vxor.u32 2147483648, %v594_v55  ;;  %v735_v23 = vshrl.u32 %v2209_v48, %v732_v57  ;;  %v738_v0 = vshrl.u32 %v2210_v50, %v732_v57  ;;  %v741_v9 = vshrl.u32 %v2211_v52, %v732_v57 }
  0xf7   : > { %v371_v63 = vsub.s32 0, %v2656_v16  ;;  %v744_v6 = vshrl.u32 %v2212_v54, %v732_v57  ;;  %v361_v21 = vadd.s32 %v2556_v22, %v2601_v60  ;;  %v391_v39 = vsub.s32 4, %v2649_v11 }
  0xf8   : > { %v596_v4 = vsel %vm513_vm3, %v595_v46, %v594_v55  ;;  %v736_v15 = vor.u32 %v735_v23, %v734_v62  ;;  %v739_v1 = vor.u32 %v738_v0, %v737_v56  ;;  %v742_v17 = vor.u32 %v741_v9, %v740_v8 }
  0xf9   : > { %v599_v7 = vsel %vm2641_vm15, %v2300_v20, %v596_v4  ;;  %v1963_v24 = vmin.u32 %v371_v63, %v2656_v16  ;;  %v745_v36 = vor.u32 %v744_v6, %v743_v10  ;;  %v2681_v2 = vshll.u32 %v725_v18, 8 }
  0xfa   : > { %2120 = vcosq.f32 %v599_v7  ;;  %v617_v33 = vand.u32 2139095040, %v2659_v29  ;;  %v746_v25 = vshll.u32 %v2212_v54, %v731_v31  ;;  %v747_v40 = vshrl.u32 %v2213_v61, %v732_v57 }
  0xfb   : > { %2122 = vsinq.f32 %v599_v7  ;;  %v373_v5 = vclz %v1963_v24  ;;  %vm749_vm0 = vcmp.lt.s32.totalorder %v730_v12, 1  ;;  %vm307_vm1 = vcmp.lt.s32.totalorder %v2308_v38, 0 }
  0xfc   : > { %v733_v26 = vshrl.u32 %v2208_v44, %v732_v57  ;;  %vm751_vm2 = vcmp.lt.s32.totalorder %v730_v12, 3  ;;  %vm752_vm3 = vcmp.lt.s32.totalorder %v730_v12, 4  ;;  %v757_v22 = vsel %vm749_vm0, %v736_v15, %v739_v1 }
  0xfd   : > { %v1964_v51 = vadd.s32 4294967294, %v373_v5  ;;  %v748_v60 = vor.u32 %v747_v40, %v746_v25  ;;  %v754_v49 = vsel %vm752_vm3, %v742_v17, 2102212464  ;;  %v758_v27 = vsel %vm752_vm3, %v745_v36, 920167782 }
  0xfe   : > { %v753_v41 = vsel %vm749_vm0, %v733_v26, %v736_v15  ;;  %v755_v32 = vsel %vm751_vm2, %v739_v1, %v754_v49  ;;  %v759_v34 = vsel %vm751_vm2, %v742_v17, %v758_v27  ;;  %vm750_vm5 = vcmp.lt.s32.totalorder %v730_v12, 2 }
  0xff   : > { %vm1965_vm4 = vcmp.lt.s32.totalorder %v1964_v51, 0  ;;  %v761_v43 = vsel %vm749_vm0, %v739_v1, %v742_v17  ;;  %vm606_vm6 = vcmp.eq.s32.totalorder %v2654_v28, 0  ;;  %v760_v37 = vsel %vm750_vm5, %v757_v22, %v759_v34 }
 0x100   : > { %v376_v30 = vsel %vm1965_vm4, 0, %v1964_v51  ;;  %v762_v13 = vsel %vm752_vm3, %v748_v60, 1326507024  ;;  %v618_v31 = vshrl.u32 %v617_v33, 23  ;;  %vm605_vm7 = vcmp.lt.s32.totalorder %v2654_v28, 2 }
 0x101   : > { %v377_v35 = vsub.s32 32, %v376_v30  ;;  %v381_v58 = vsub.s32 4294967266, %v376_v30  ;;  %v378_v45 = vshll.u32 %v2656_v16, %v376_v30  ;;  %vm2701_vm8 = vcmp.le.f32.partialorder %v305_v47, 0.7853982 }
 0x102   : > { %v756_v57 = vsel %vm750_vm5, %v753_v41, %v755_v32  ;;  %v763_v46 = vsel %vm751_vm2, %v745_v36, %v762_v13  ;;  %vm603_vm9 = vweird.f32 %v2300_v20  ;;  %v1974_v23 = vadd.s32 4294967169, %v618_v31 }
 0x103   : > { %v379_v42 = vshrl.u32 %v361_v21, %v377_v35  ;;  %v382_v55 = vadd.s32 127, %v381_v58  ;;  %v764_v16 = vsel %vm750_vm5, %v761_v43, %v763_v46  ;;  %vm609_vm10 = vcmp.eq.s32.totalorder %v2654_v28, 2 }
 0x104   : > { %v2708_v59 = vmul.u32.u64.low %v2681_v2, %v760_v37  ;;  %v2709_v18 = vmul.u32.u64.high %v2681_v2, %v760_v37, %v2708_v59  ;;  %v2713_v47 = vmul.u32.u64.low %v2681_v2, %v764_v16  ;;  %v2714_v0 = vmul.u32.u64.high %v2681_v2, %v764_v16, %v2713_v47 }
 0x105   : > { %v380_v63 = vor.u32 %v379_v42, %v378_v45  ;;  %v383_v62 = vshll.u32 %v382_v55, 23  ;;  %vm1441_vm11 = vcmp.lt.s32.totalorder %v2676_v53, 2  ;;  %vm1442_vm12 = vcmp.eq.s32.totalorder %v2676_v53, 0 }
 0x106   : > { %v624_v12 = vadd.s32 1, %v1974_v23  ;;  %vm1445_vm13 = vcmp.eq.s32.totalorder %v2676_v53, 2  ;;  %v392_v9 = vsel %vm307_vm1, %v391_v39, %v2649_v11  ;;  %v614_v6 = vand.u32 2147483647, %v2659_v29 }
 0x107   : > { %v2121_v4 = vpop.eup %2120  ;;  %v384_v56 = vor.u32 4788187, %v383_v62  ;;  %v772_v8 = vmul.u32 %v2681_v2, %v756_v57  ;;  %v775_v10 = vadd.s32 1, %v2709_v18  ;;  %v387_v5 = vcvt.s32.f32 %v380_v63 }
 0x108   : > { %v2123_v7 = vpop.eup %2122  ;;  %v610_v24 = vxor.u32 2147483648, %v2121_v4  ;;  %vm625_vm14 = vcmp.gt.s32.totalorder %v624_v12, 0  ;;  %vm774_vm15 = vc.u32 %v2714_v0, %v2708_v59  ;;  %v394_v26 = vsel %vm2701_vm8, 0, %v392_v9 }
 0x109   : > { %v607_v15 = vxor.u32 2147483648, %v2123_v7  ;;  %v385_v1 = vand.u32 2147483647, %v384_v56  ;;  %v776_v36 = vsel %vm774_vm15, %v775_v10, %v2709_v18  ;;  %v626_v21 = vsel %vm625_vm14, %v624_v12, 0 }
 0x10a   : > { %v611_v17 = vsel %vm609_vm10, %v610_v24, %v2123_v7  ;;  %v1447_v11 = vsel %vm1445_vm13, %v610_v24, %v2123_v7  ;;  %v777_v51 = vadd.s32 %v776_v36, %v772_v8  ;;  %v628_v22 = vand.u32 31, %v626_v21  ;;  %v192_v8 = vpop.permute.xlu1 %191 }
 0x10b   : > { %v608_v39 = vsel %vm606_vm6, %v2121_v4, %v607_v15  ;;  %v1444_v2 = vsel %vm1442_vm12, %v2121_v4, %v607_v15  ;;  %v388_v33 = vmul.f32 %v387_v5, %v385_v1  ;;  %v621_v28 = vand.u32 8388607, %v614_v6 }
 0x10c   : > { %v612_v25 = vsel %vm605_vm7, %v608_v39, %v611_v17  ;;  %v1448_v40 = vsel %vm1441_vm11, %v1444_v2, %v1447_v11  ;;  %v778_v30 = vadd.s32 536870912, %v777_v51  ;;  %v629_v41 = vsub.s32 32, %v628_v22  ;;  %v2144_v2 = vld [vmem:[%s3092_s1] sm:$0xff] }
 0x10d   : > { %v613_v60 = vsel %vm603_vm9, nan, %v612_v25  ;;  %v1449_v49 = vsel %vm603_vm9, nan, %v1448_v40  ;;  %v389_v27 = vxor.u32 2147483648, %v388_v33  ;;  %v2751_v32 = vand.u32 3, %v394_v26 }
 0x10e   : > { %1029 = vst [vmem:[%s2604_s30 + $0x30] sm:$0xff] %v613_v60  ;;  %1869 = vst [vmem:[%s2604_s30 + $0x38] sm:$0xff] %v1449_v49  ;;  %v1231_v34 = vadd.s32 3, %v394_v26  ;;  %v2753_v35 = vshrl.u32 %v778_v30, 30  ;;  %v631_v58 = vshll.u32 %v2208_v44, %v628_v22  ;;  %v632_v43 = vshrl.u32 %v2209_v48, %v629_v41 }
 0x10f   : > { %v390_v53 = vsel %vm307_vm1, %v389_v27, %v388_v33  ;;  %v635_v45 = vshrl.u32 %v2210_v50, %v629_v41  ;;  %v634_v13 = vshll.u32 %v2209_v48, %v628_v22  ;;  %v638_v31 = vshrl.u32 %v2211_v52, %v629_v41 }
 0x110   : > { %v393_v20 = vsel %vm2701_vm8, %v2308_v38, %v390_v53  ;;  %v780_v37 = vshll.u32 %v2753_v35, 30  ;;  %v637_v42 = vshll.u32 %v2210_v50, %v628_v22  ;;  %v640_v55 = vshll.u32 %v2211_v52, %v628_v22 }
 0x111   : > { %2124 = vcosq.f32 %v393_v20  ;;  %v641_v14 = vshrl.u32 %v2212_v54, %v629_v41  ;;  %v627_v46 = vshrl.u32 %v626_v21, 5  ;;  %v643_v16 = vshll.u32 %v2212_v54, %v628_v22 }
 0x112   : > { %2126 = vsinq.f32 %v393_v20  ;;  %v2767_v57 = vsub.s32 %v777_v51, %v780_v37  ;;  %v644_v18 = vshrl.u32 %v2213_v61, %v629_v41  ;;  %v633_v23 = vor.u32 %v632_v43, %v631_v58 }
 0x113   : > { %v636_v63 = vor.u32 %v635_v45, %v634_v13  ;;  %v639_v62 = vor.u32 %v638_v31, %v637_v42  ;;  %v642_v47 = vor.u32 %v641_v14, %v640_v55  ;;  %v2771_v12 = vand.u32 3, %v1231_v34 }
 0x114   : > { %v783_v4 = vsub.s32 0, %v2767_v57  ;;  %v645_v56 = vor.u32 %v644_v18, %v643_v16  ;;  %vm719_vm0 = vcmp.lt.s32.totalorder %v2489_v19, 0  ;;  %v622_v9 = vor.u32 8388608, %v621_v28 }
 0x115   : > { %v630_v24 = vshrl.u32 %v2208_v44, %v629_v41  ;;  %vm646_vm1 = vcmp.lt.s32.totalorder %v627_v46, 1  ;;  %vm649_vm2 = vcmp.lt.s32.totalorder %v627_v46, 4  ;;  %vm403_vm3 = vcmp.eq.s32.totalorder %v2751_v32, 2 }
 0x116   : > { %v1979_v7 = vmin.u32 %v783_v4, %v2767_v57  ;;  %vm648_vm4 = vcmp.lt.s32.totalorder %v627_v46, 3  ;;  %v651_v10 = vsel %vm649_vm2, %v639_v62, 2102212464  ;;  %v654_v15 = vsel %vm646_vm1, %v633_v23, %v636_v63 }
 0x117   : > { %v655_v1 = vsel %vm649_vm2, %v642_v47, 920167782  ;;  %vm400_vm5 = vcmp.eq.s32.totalorder %v2751_v32, 0  ;;  %vm1234_vm6 = vcmp.eq.s32.totalorder %v2771_v12, 0  ;;  %v658_v11 = vsel %vm646_vm1, %v636_v63, %v639_v62 }
 0x118   : > { %v785_v5 = vclz %v1979_v7  ;;  %v656_v17 = vsel %vm648_vm4, %v639_v62, %v655_v1  ;;  %v659_v36 = vsel %vm649_vm2, %v645_v56, 1326507024  ;;  %vm399_vm7 = vcmp.lt.s32.totalorder %v2751_v32, 2 }
 0x119   : > { %vm1233_vm8 = vcmp.lt.s32.totalorder %v2771_v12, 2  ;;  %v803_v21 = vsub.s32 4, %v2753_v35  ;;  %vm647_vm9 = vcmp.lt.s32.totalorder %v627_v46, 2  ;;  %v662_v39 = vshll.u32 %v622_v9, 8 }
 0x11a   : > { %v2789_v33 = vmul.f32 %v2144_v2, %v192_v8  ;;  %vm397_vm10 = vweird.f32 %v2308_v38  ;;  %v1980_v51 = vadd.s32 4294967294, %v785_v5  ;;  %v650_v25 = vsel %vm646_vm1, %v630_v24, %v633_v23 }
 0x11b   : > { %v657_v40 = vsel %vm647_vm9, %v654_v15, %v656_v17  ;;  %v660_v26 = vsel %vm648_vm4, %v642_v47, %v659_v36  ;;  %v652_v22 = vsel %vm648_vm4, %v636_v63, %v651_v10  ;;  %vm1237_vm11 = vcmp.eq.s32.totalorder %v2771_v12, 2  ;;  %v187_v63 = vpop.permute.xlu0 %186 }
 0x11c   : > { %v661_v60 = vsel %vm647_vm9, %v658_v11, %v660_v26  ;;  %v2797_v49 = vmul.u32.u64.low %v662_v39, %v657_v40  ;;  %v2798_v27 = vmul.u32.u64.high %v662_v39, %v657_v40, %v2797_v49  ;;  %vm1981_vm12 = vcmp.lt.s32.totalorder %v1980_v51, 0 }
 0x11d   : > { %v2802_v30 = vmul.u32.u64.low %v662_v39, %v661_v60  ;;  %v2803_v28 = vmul.u32.u64.high %v662_v39, %v661_v60, %v2802_v30  ;;  %v773_v53 = vadd.s32 %v2708_v59, %v2714_v0  ;;  %v788_v34 = vsel %vm1981_vm12, 0, %v1980_v51 }
 0x11e   : > { %v2125_v41 = vpop.eup %2124  ;;  %v804_v20 = vsel %vm719_vm0, %v803_v21, %v2753_v35  ;;  %v926_v58 = vand.u32 2139095040, %v2789_v33  ;;  %v789_v37 = vsub.s32 32, %v788_v34  ;;  %v793_v13 = vsub.s32 4294967266, %v788_v34 }
 0x11f   : > { %v2127_v43 = vpop.eup %2126  ;;  %v404_v45 = vxor.u32 2147483648, %v2125_v41  ;;  %v653_v31 = vsel %vm647_vm9, %v650_v25, %v652_v22  ;;  %v790_v55 = vshll.u32 %v2767_v57, %v788_v34  ;;  %v672_v14 = vadd.s32 1, %v2798_v27 }
 0x120   : > { %v401_v42 = vxor.u32 2147483648, %v2127_v43  ;;  %v927_v16 = vshrl.u32 %v926_v58, 23  ;;  %v791_v35 = vshrl.u32 %v773_v53, %v789_v37  ;;  %v794_v18 = vadd.s32 127, %v793_v13 }
 0x121   : > { %v405_v59 = vsel %vm403_vm3, %v404_v45, %v2127_v43  ;;  %v1239_v0 = vsel %vm1237_vm11, %v404_v45, %v2127_v43  ;;  %v669_v57 = vmul.u32 %v662_v39, %v653_v31  ;;  %vm671_vm13 = vc.u32 %v2803_v28, %v2797_v49 }
 0x122   : > { %v402_v46 = vsel %vm400_vm5, %v2125_v41, %v401_v42  ;;  %v1236_v23 = vsel %vm1234_vm6, %v2125_v41, %v401_v42  ;;  %v792_v4 = vor.u32 %v791_v35, %v790_v55  ;;  %v795_v56 = vshll.u32 %v794_v18, 23 }
 0x123   : > { %v406_v62 = vsel %vm399_vm7, %v402_v46, %v405_v59  ;;  %v1240_v47 = vsel %vm1233_vm8, %v1236_v23, %v1239_v0  ;;  %v673_v24 = vsel %vm671_vm13, %v672_v14, %v2798_v27  ;;  %v1986_v8 = vadd.s32 4294967169, %v927_v16 }
 0x124   : > { %v407_v9 = vsel %vm397_vm10, nan, %v406_v62  ;;  %v1241_v7 = vsel %vm397_vm10, nan, %v1240_v47  ;;  %v796_v10 = vor.u32 4788187, %v795_v56  ;;  %v674_v15 = vadd.s32 %v673_v24, %v669_v57 }
 0x125   : > { %1027 = vst [vmem:[%s2604_s30 + $0x10] sm:$0xff] %v407_v9  ;;  %1867 = vst [vmem:[%s2604_s30 + $0x18] sm:$0xff] %v1241_v7  ;;  %v2835_v32 = vmul.f32 %v2144_v2, %v187_v63  ;;  %vm2839_vm14 = vcmp.le.f32.partialorder %v717_v3, 0.7853982  ;;  %v923_v1 = vand.u32 2147483647, %v2789_v33  ;;  %v799_v17 = vcvt.s32.f32 %v792_v4 }
 0x126   : > { %v933_v5 = vadd.s32 1, %v1986_v8  ;;  %v797_v38 = vand.u32 2147483647, %v796_v10  ;;  %v806_v11 = vsel %vm2839_vm14, 0, %v804_v20  ;;  %v675_v36 = vadd.s32 536870912, %v674_v15 }
 0x127   : > { %v823_v51 = vand.u32 2139095040, %v2835_v32  ;;  %v1647_v3 = vadd.s32 3, %v806_v11  ;;  %v930_v25 = vand.u32 8388607, %v923_v1  ;;  %v2854_v30 = vand.u32 3, %v806_v11 }
 0x128   : > { %vm934_vm15 = vcmp.gt.s32.totalorder %v933_v5, 0  ;;  %v800_v21 = vmul.f32 %v799_v17, %v797_v38  ;;  %v2846_v39 = vshrl.u32 %v675_v36, 30  ;;  %v670_v45 = vadd.s32 %v2797_v49, %v2803_v28 }
 0x129   : > { %v935_v2 = vsel %vm934_vm15, %v933_v5, 0  ;;  %v824_v53 = vshrl.u32 %v823_v51, 23  ;;  %v2861_v20 = vand.u32 3, %v1647_v3  ;;  %v931_v58 = vor.u32 8388608, %v930_v25 }
 0x12a   : > { %v937_v40 = vand.u32 31, %v935_v2  ;;  %v801_v26 = vxor.u32 2147483648, %v800_v21  ;;  %v677_v22 = vshll.u32 %v2846_v39, 30  ;;  %v2872_v16 = vshrl.u32 %v935_v2, 5 }
 0x12b   : > { %v1982_v0 = vadd.s32 4294967169, %v824_v53  ;;  %v700_v62 = vsub.s32 4, %v2846_v39  ;;  %v2880_v4 = vshll.u32 %v931_v58, 8  ;;  %v820_v56 = vand.u32 2147483647, %v2835_v32 }
 0x12c   : > { %v938_v60 = vsub.s32 32, %v937_v40  ;;  %v802_v27 = vsel %vm719_vm0, %v801_v26, %v800_v21  ;;  %v2856_v41 = vsub.s32 %v674_v15, %v677_v22  ;;  %v940_v13 = vshll.u32 %v2208_v44, %v937_v40 }
 0x12d   : > { %v805_v34 = vsel %vm2839_vm14, %v2489_v19, %v802_v27  ;;  %v943_v31 = vshll.u32 %v2209_v48, %v937_v40  ;;  %v946_v59 = vshll.u32 %v2210_v50, %v937_v40  ;;  %v949_v28 = vshll.u32 %v2211_v52, %v937_v40 }
 0x12e   : > { %v941_v43 = vshrl.u32 %v2209_v48, %v938_v60  ;;  %2128 = vcosq.f32 %v805_v34  ;;  %v680_v37 = vsub.s32 0, %v2856_v41  ;;  %v944_v42 = vshrl.u32 %v2210_v50, %v938_v60 }
 0x12f   : > { %2130 = vsinq.f32 %v805_v34  ;;  %v947_v55 = vshrl.u32 %v2211_v52, %v938_v60  ;;  %v950_v18 = vshrl.u32 %v2212_v54, %v938_v60  ;;  %v952_v57 = vshll.u32 %v2212_v54, %v937_v40 }
 0x130   : > { %v1975_v14 = vmin.u32 %v680_v37, %v2856_v41  ;;  %v942_v35 = vor.u32 %v941_v43, %v940_v13  ;;  %v945_v49 = vor.u32 %v944_v42, %v943_v31  ;;  %v953_v63 = vshrl.u32 %v2213_v61, %v938_v60 }
 0x131   : > { %v948_v23 = vor.u32 %v947_v55, %v946_v59  ;;  %v951_v47 = vor.u32 %v950_v18, %v949_v28  ;;  %vm616_vm0 = vcmp.lt.s32.totalorder %v2659_v29, 0  ;;  %v939_v7 = vshrl.u32 %v2208_v44, %v938_v60 }
 0x132   : > { %v682_v46 = vclz %v1975_v14  ;;  %v954_v24 = vor.u32 %v953_v63, %v952_v57  ;;  %vm955_vm1 = vcmp.lt.s32.totalorder %v2872_v16, 1  ;;  %vm815_vm2 = vcmp.eq.s32.totalorder %v2854_v30, 2 }
 0x133   : > { %vm956_vm3 = vcmp.lt.s32.totalorder %v2872_v16, 2  ;;  %vm957_vm4 = vcmp.lt.s32.totalorder %v2872_v16, 3  ;;  %vm958_vm5 = vcmp.lt.s32.totalorder %v2872_v16, 4  ;;  %v963_v8 = vsel %vm955_vm1, %v942_v35, %v945_v49 }
 0x134   : > { %v1976_v9 = vadd.s32 4294967294, %v682_v46  ;;  %vm812_vm6 = vcmp.eq.s32.totalorder %v2854_v30, 0  ;;  %vm1650_vm7 = vcmp.eq.s32.totalorder %v2861_v20, 0  ;;  %v960_v10 = vsel %vm958_vm5, %v948_v23, 2102212464 }
 0x135   : > { %v964_v15 = vsel %vm958_vm5, %v951_v47, 920167782  ;;  %v830_v12 = vadd.s32 1, %v1982_v0  ;;  %vm811_vm9 = vcmp.lt.s32.totalorder %v2854_v30, 2  ;;  %vm1649_vm10 = vcmp.lt.s32.totalorder %v2861_v20, 2 }
 0x136   : > { %vm1977_vm8 = vcmp.lt.s32.totalorder %v1976_v9, 0  ;;  %v965_v38 = vsel %vm957_vm4, %v948_v23, %v964_v15  ;;  %v967_v17 = vsel %vm955_vm1, %v945_v49, %v948_v23  ;;  %v968_v11 = vsel %vm958_vm5, %v954_v24, 1326507024 }
 0x137   : > { %v685_v5 = vsel %vm1977_vm8, 0, %v1976_v9  ;;  %vm809_vm11 = vweird.f32 %v2489_v19  ;;  %v959_v2 = vsel %vm955_vm1, %v939_v7, %v942_v35  ;;  %v961_v51 = vsel %vm957_vm4, %v945_v49, %v960_v10 }
 0x138   : > { %v686_v36 = vsub.s32 32, %v685_v5  ;;  %v690_v21 = vsub.s32 4294967266, %v685_v5  ;;  %v687_v3 = vshll.u32 %v2856_v41, %v685_v5  ;;  %v966_v25 = vsel %vm956_vm3, %v963_v8, %v965_v38 }
 0x139   : > { %v969_v40 = vsel %vm957_vm4, %v951_v47, %v968_v11  ;;  %vm831_vm12 = vcmp.gt.s32.totalorder %v830_v12, 0  ;;  %v2917_v41 = vmul.u32.u64.low %v2880_v4, %v966_v25  ;;  %v2918_v43 = vmul.u32.u64.high %v2880_v4, %v966_v25, %v2917_v41 }
 0x13a   : > { %v688_v26 = vshrl.u32 %v670_v45, %v686_v36  ;;  %v691_v22 = vadd.s32 127, %v690_v21  ;;  %v970_v60 = vsel %vm956_vm3, %v967_v17, %v969_v40  ;;  %v832_v27 = vsel %vm831_vm12, %v830_v12, 0 }
 0x13b   : > { %v2129_v53 = vpop.eup %2128  ;;  %v2913_v34 = vmul.u32.u64.low %v2880_v4, %v970_v60  ;;  %v2914_v58 = vmul.u32.u64.high %v2880_v4, %v970_v60, %v2913_v34  ;;  %vm1653_vm13 = vcmp.eq.s32.totalorder %v2861_v20, 2  ;;  %v701_v55 = vsel %vm616_vm0, %v700_v62, %v2846_v39 }
 0x13c   : > { %v2131_v37 = vpop.eup %2130  ;;  %v816_v13 = vxor.u32 2147483648, %v2129_v53  ;;  %v689_v45 = vor.u32 %v688_v26, %v687_v3  ;;  %v692_v31 = vshll.u32 %v691_v22, 23  ;;  %v2927_v14 = vand.u32 8388607, %v820_v56 }
 0x13d   : > { %v813_v42 = vxor.u32 2147483648, %v2131_v37  ;;  %v834_v59 = vand.u32 31, %v832_v27  ;;  %vm2933_vm14 = vcmp.le.f32.partialorder %v614_v6, 0.7853982  ;;  %v962_v39 = vsel %vm956_vm3, %v959_v2, %v961_v51 }
 0x13e   : > { %v817_v0 = vsel %vm815_vm2, %v816_v13, %v2131_v37  ;;  %v1655_v35 = vsel %vm1653_vm13, %v816_v13, %v2131_v37  ;;  %v693_v28 = vor.u32 4788187, %v692_v31  ;;  %v696_v23 = vcvt.s32.f32 %v689_v45 }
 0x13f   : > { %v814_v18 = vsel %vm812_vm6, %v2129_v53, %v813_v42  ;;  %v1652_v46 = vsel %vm1650_vm7, %v2129_v53, %v813_v42  ;;  %vm980_vm15 = vc.u32 %v2914_v58, %v2917_v41  ;;  %v981_v16 = vadd.s32 1, %v2918_v43 }
 0x140   : > { %v818_v6 = vsel %vm811_vm9, %v814_v18, %v817_v0  ;;  %v1656_v57 = vsel %vm1649_vm10, %v1652_v46, %v1655_v35  ;;  %v694_v63 = vand.u32 2147483647, %v693_v28  ;;  %v978_v9 = vmul.u32 %v2880_v4, %v962_v39 }
 0x141   : > { %v819_v62 = vsel %vm809_vm11, nan, %v818_v6  ;;  %v1657_v47 = vsel %vm809_vm11, nan, %v1656_v57  ;;  %v835_v7 = vsub.s32 32, %v834_v59  ;;  %v982_v30 = vsel %vm980_vm15, %v981_v16, %v2918_v43 }
 0x142   : > { %1031 = vst [vmem:[%s2604_s30 + $0x50] sm:$0xff] %v819_v62  ;;  %1871 = vst [vmem:[%s2604_s30 + $0x58] sm:$0xff] %v1657_v47  ;;  %v697_v24 = vmul.f32 %v696_v23, %v694_v63  ;;  %v833_v8 = vshrl.u32 %v832_v27, 5  ;;  %v837_v20 = vshll.u32 %v2208_v44, %v834_v59  ;;  %v983_v10 = vadd.s32 %v982_v30, %v978_v9 }
 0x143   : > { %v838_v15 = vshrl.u32 %v2209_v48, %v835_v7  ;;  %v840_v12 = vshll.u32 %v2209_v48, %v834_v59  ;;  %v841_v5 = vshrl.u32 %v2210_v50, %v835_v7  ;;  %v844_v38 = vshrl.u32 %v2211_v52, %v835_v7 }
 0x144   : > { %v698_v19 = vxor.u32 2147483648, %v697_v24  ;;  %v846_v4 = vshll.u32 %v2211_v52, %v834_v59  ;;  %v847_v17 = vshrl.u32 %v2212_v54, %v835_v7  ;;  %v984_v11 = vadd.s32 536870912, %v983_v10 }
 0x145   : > { %v839_v36 = vor.u32 %v838_v15, %v837_v20  ;;  %v842_v21 = vor.u32 %v841_v5, %v840_v12  ;;  %v843_v2 = vshll.u32 %v2210_v50, %v834_v59  ;;  %v849_v48 = vshll.u32 %v2212_v54, %v834_v59 }
 0x146   : > { %v699_v51 = vsel %vm616_vm0, %v698_v19, %v697_v24  ;;  %v848_v3 = vor.u32 %v847_v17, %v846_v4  ;;  %v850_v25 = vshrl.u32 %v2213_v61, %v835_v7  ;;  %v2973_v52 = vshrl.u32 %v984_v11, 30 }
 0x147   : > { %v702_v40 = vsel %vm2933_vm14, %v2659_v29, %v699_v51  ;;  %v828_v26 = vor.u32 8388608, %v2927_v14  ;;  %v845_v22 = vor.u32 %v844_v38, %v843_v2  ;;  %v703_v50 = vsel %vm2933_vm14, 0, %v701_v55 }
 0x148   : > { %2132 = vcosq.f32 %v702_v40  ;;  %v836_v60 = vshrl.u32 %v2208_v44, %v835_v7  ;;  %v851_v27 = vor.u32 %v850_v25, %v849_v48  ;;  %v986_v54 = vshll.u32 %v2973_v52, 30 }
 0x149   : > { %2134 = vsinq.f32 %v702_v40  ;;  %vm852_vm0 = vcmp.lt.s32.totalorder %v833_v8, 1  ;;  %vm855_vm1 = vcmp.lt.s32.totalorder %v833_v8, 4  ;;  %vm853_vm2 = vcmp.lt.s32.totalorder %v833_v8, 2 }
 0x14a   : > { %vm854_vm3 = vcmp.lt.s32.totalorder %v833_v8, 3  ;;  %v860_v61 = vsel %vm852_vm0, %v839_v36, %v842_v21  ;;  %v861_v53 = vsel %vm855_vm1, %v848_v3, 920167782  ;;  %v987_v34 = vsub.s32 %v983_v10, %v986_v54 }
 0x14b   : > { %v857_v43 = vsel %vm855_vm1, %v845_v22, 2102212464  ;;  %v862_v37 = vsel %vm854_vm3, %v845_v22, %v861_v53  ;;  %v864_v13 = vsel %vm852_vm0, %v842_v21, %v845_v22  ;;  %v865_v31 = vsel %vm855_vm1, %v851_v27, 1326507024 }
 0x14c   : > { %v863_v45 = vsel %vm853_vm2, %v860_v61, %v862_v37  ;;  %v868_v42 = vshll.u32 %v828_v26, 8  ;;  %v1543_v55 = vadd.s32 3, %v703_v50  ;;  %v989_v44 = vsub.s32 0, %v987_v34 }
 0x14d   : > { %v856_v14 = vsel %vm852_vm0, %v836_v60, %v839_v36  ;;  %v866_v59 = vsel %vm854_vm3, %v848_v3, %v865_v31  ;;  %v858_v0 = vsel %vm854_vm3, %v842_v21, %v857_v43  ;;  %v707_v39 = vand.u32 3, %v703_v50 }
 0x14e   : > { %v867_v35 = vsel %vm853_vm2, %v864_v13, %v866_v59  ;;  %v2982_v49 = vmul.u32.u64.low %v868_v42, %v863_v45  ;;  %v2983_v28 = vmul.u32.u64.high %v868_v42, %v863_v45, %v2982_v49  ;;  %v1987_v18 = vmin.u32 %v989_v44, %v987_v34 }
 0x14f   : > { %v2986_v46 = vmul.u32.u64.low %v868_v42, %v867_v35  ;;  %v2987_v23 = vmul.u32.u64.high %v868_v42, %v867_v35, %v2986_v46  ;;  %v1544_v6 = vand.u32 3, %v1543_v55  ;;  %v859_v63 = vsel %vm853_vm2, %v856_v14, %v858_v0 }
 0x150   : > { %v991_v57 = vclz %v1987_v18  ;;  %v878_v16 = vadd.s32 1, %v2983_v28  ;;  %vm708_vm4 = vcmp.lt.s32.totalorder %v707_v39, 2  ;;  %vm709_vm5 = vcmp.eq.s32.totalorder %v707_v39, 0 }
 0x151   : > { %vm712_vm6 = vcmp.eq.s32.totalorder %v707_v39, 2  ;;  %v875_v47 = vmul.u32 %v868_v42, %v859_v63  ;;  %vm877_vm7 = vc.u32 %v2987_v23, %v2982_v49  ;;  %vm1545_vm8 = vcmp.lt.s32.totalorder %v1544_v6, 2 }
 0x152   : > { %v1988_v62 = vadd.s32 4294967294, %v991_v57  ;;  %vm1546_vm9 = vcmp.eq.s32.totalorder %v1544_v6, 0  ;;  %v879_v7 = vsel %vm877_vm7, %v878_v16, %v2983_v28  ;;  %vm1549_vm11 = vcmp.eq.s32.totalorder %v1544_v6, 2 }
 0x153   : > { %v880_v20 = vadd.s32 %v879_v7, %v875_v47  ;;  %v979_v15 = vadd.s32 %v2917_v41, %v2914_v58  ;;  %vm706_vm12 = vweird.f32 %v2659_v29  ;;  %vm925_vm13 = vcmp.lt.s32.totalorder %v2789_v33, 0 }
 0x154   : > { %vm1989_vm10 = vcmp.lt.s32.totalorder %v1988_v62, 0  ;;  %vm924_vm14 = vcmp.le.f32.partialorder %v923_v1, 0.7853982  ;;  %v876_v55 = vadd.s32 %v2982_v49, %v2987_v23  ;;  %vm822_vm0 = vcmp.lt.s32.totalorder %v2835_v32, 0 }
 0x155   : > { %v2133_v9 = vpop.eup %2132  ;;  %v994_v8 = vsel %vm1989_vm10, 0, %v1988_v62  ;;  %v881_v17 = vadd.s32 536870912, %v880_v20  ;;  %vm3018_vm3 = vcmp.le.f32.partialorder %v820_v56, 0.7853982 }
 0x156   : > { %v2135_v24 = vpop.eup %2134  ;;  %v713_v30 = vxor.u32 2147483648, %v2133_v9  ;;  %v995_v12 = vsub.s32 32, %v994_v8  ;;  %v999_v5 = vsub.s32 4294967266, %v994_v8  ;;  %v996_v4 = vshll.u32 %v987_v34, %v994_v8 }
 0x157   : > { %v710_v10 = vxor.u32 2147483648, %v2135_v24  ;;  %v3002_v41 = vshrl.u32 %v881_v17, 30  ;;  %v1009_v34 = vsub.s32 4, %v2973_v52 }
 0x158   : > { %v714_v19 = vsel %vm712_vm6, %v713_v30, %v2135_v24  ;;  %v1551_v38 = vsel %vm1549_vm11, %v713_v30, %v2135_v24  ;;  %v997_v21 = vshrl.u32 %v979_v15, %v995_v12  ;;  %v1000_v2 = vadd.s32 127, %v999_v5 }
 0x159   : > { %v711_v11 = vsel %vm709_vm5, %v2133_v9, %v710_v10  ;;  %v1548_v36 = vsel %vm1546_vm9, %v2133_v9, %v710_v10  ;;  %v883_v26 = vshll.u32 %v3002_v41, 30  ;;  %v1010_v31 = vsel %vm925_vm13, %v1009_v34, %v2973_v52 }
 0x15a   : > { %v715_v51 = vsel %vm708_vm4, %v711_v11, %v714_v19  ;;  %v1552_v58 = vsel %vm1545_vm8, %v1548_v36, %v1551_v38  ;;  %v998_v25 = vor.u32 %v997_v21, %v996_v4  ;;  %v1001_v40 = vshll.u32 %v1000_v2, 23 }
 0x15b   : > { %v716_v3 = vsel %vm706_vm12, nan, %v715_v51  ;;  %v1553_v48 = vsel %vm706_vm12, nan, %v1552_v58  ;;  %v884_v50 = vsub.s32 %v880_v20, %v883_v26  ;;  %v1012_v59 = vsel %vm924_vm14, 0, %v1010_v31 }
 0x15c   : > { %1030 = vst [vmem:[%s2604_s30 + $0x40] sm:$0xff] %v716_v3  ;;  %1870 = vst [vmem:[%s2604_s30 + $0x48] sm:$0xff] %v1553_v48  ;;  %v1002_v22 = vor.u32 4788187, %v1001_v40  ;;  %v1005_v27 = vcvt.s32.f32 %v998_v25  ;;  %v1855_v1 = vadd.s32 3, %v1012_v59  ;;  %v1016_v6 = vand.u32 3, %v1012_v59 }
 0x15d   : > { %v886_v54 = vsub.s32 0, %v884_v50  ;;  %v906_v8 = vsub.s32 4, %v3002_v41  ;;  %vm1015_vm8 = vweird.f32 %v2789_v33 }
 0x15e   : > { %v1003_v60 = vand.u32 2147483647, %v1002_v22  ;;  %v1856_v57 = vand.u32 3, %v1855_v1  ;;  %vm1017_vm1 = vcmp.lt.s32.totalorder %v1016_v6, 2  ;;  %vm1018_vm2 = vcmp.eq.s32.totalorder %v1016_v6, 0 }
 0x15f   : > { %v1983_v61 = vmin.u32 %v886_v54, %v884_v50  ;;  %vm1021_vm4 = vcmp.eq.s32.totalorder %v1016_v6, 2  ;;  %v907_v4 = vsel %vm822_vm0, %v906_v8, %v3002_v41 }
 0x160   : > { %v1006_v29 = vmul.f32 %v1005_v27, %v1003_v60  ;;  %vm1861_vm5 = vcmp.eq.s32.totalorder %v1856_v57, 2  ;;  %vm1858_vm6 = vcmp.eq.s32.totalorder %v1856_v57, 0  ;;  %vm1857_vm7 = vcmp.lt.s32.totalorder %v1856_v57, 2 }
 0x161   : > { %v888_v43 = vclz %v1983_v61 }
 0x162   : > { %v1007_v53 = vxor.u32 2147483648, %v1006_v29 }
 0x163   : > { %v1984_v45 = vadd.s32 4294967294, %v888_v43 }
 0x164   : > { %v1008_v37 = vsel %vm925_vm13, %v1007_v53, %v1006_v29 }
 0x165   : > { %v1011_v13 = vsel %vm924_vm14, %v2789_v33, %v1008_v37  ;;  %vm1985_vm15 = vcmp.lt.s32.totalorder %v1984_v45, 0  ;;  %v909_v33 = vsel %vm3018_vm3, 0, %v907_v4 }
 0x166   : > { %2136 = vcosq.f32 %v1011_v13  ;;  %v891_v42 = vsel %vm1985_vm15, 0, %v1984_v45  ;;  %v1751_v17 = vadd.s32 3, %v909_v33  ;;  %v913_v11 = vand.u32 3, %v909_v33 }
 0x167   : > { %2138 = vsinq.f32 %v1011_v13  ;;  %v892_v44 = vsub.s32 32, %v891_v42  ;;  %v896_v14 = vsub.s32 4294967266, %v891_v42  ;;  %v893_v0 = vshll.u32 %v884_v50, %v891_v42 }
 0x168   : > { %v1752_v36 = vand.u32 3, %v1751_v17  ;;  %vm918_vm9 = vcmp.eq.s32.totalorder %v913_v11, 2  ;;  %vm915_vm11 = vcmp.eq.s32.totalorder %v913_v11, 0  ;;  %vm914_vm13 = vcmp.lt.s32.totalorder %v913_v11, 2 }
 0x169   : > { %v894_v35 = vshrl.u32 %v876_v55, %v892_v44  ;;  %v897_v28 = vadd.s32 127, %v896_v14  ;;  %vm912_vm15 = vweird.f32 %v2835_v32 }
 0x16a   : > { %vm1757_vm10 = vcmp.eq.s32.totalorder %v1752_v36, 2  ;;  %vm1754_vm12 = vcmp.eq.s32.totalorder %v1752_v36, 0  ;;  %vm1753_vm14 = vcmp.lt.s32.totalorder %v1752_v36, 2 }
 0x16b   : > { %v895_v39 = vor.u32 %v894_v35, %v893_v0  ;;  %v898_v18 = vshll.u32 %v897_v28, 23 }
 0x16d   : > { %v899_v46 = vor.u32 4788187, %v898_v18  ;;  %v902_v52 = vcvt.s32.f32 %v895_v39 }
 0x16f   : > { %v900_v63 = vand.u32 2147483647, %v899_v46 }
 0x171   : > { %v903_v62 = vmul.f32 %v902_v52, %v900_v63 }
 0x173   : > { %v2137_v16 = vpop.eup %2136  ;;  %v904_v7 = vxor.u32 2147483648, %v903_v62 }
 0x174   : > { %v2139_v47 = vpop.eup %2138  ;;  %v1022_v49 = vxor.u32 2147483648, %v2137_v16 }
 0x175   : > { %v1019_v9 = vxor.u32 2147483648, %v2139_v47  ;;  %v905_v56 = vsel %vm822_vm0, %v904_v7, %v903_v62 }
 0x176   : > { %v1023_v24 = vsel %vm1021_vm4, %v1022_v49, %v2139_v47  ;;  %v1863_v30 = vsel %vm1861_vm5, %v1022_v49, %v2139_v47  ;;  %v908_v5 = vsel %vm3018_vm3, %v2835_v32, %v905_v56 }
 0x177   : > { %v1020_v20 = vsel %vm1018_vm2, %v2137_v16, %v1019_v9  ;;  %v1860_v10 = vsel %vm1858_vm6, %v2137_v16, %v1019_v9  ;;  %2140 = vcosq.f32 %v908_v5 }
 0x178   : > { %v1024_v15 = vsel %vm1017_vm1, %v1020_v20, %v1023_v24  ;;  %v1864_v12 = vsel %vm1857_vm7, %v1860_v10, %v1863_v30  ;;  %2142 = vsinq.f32 %v908_v5 }
 0x179   : > { %v1025_v19 = vsel %vm1015_vm8, nan, %v1024_v15  ;;  %v1865_v38 = vsel %vm1015_vm8, nan, %v1864_v12 }
 0x17a   : > { %1033 = vst [vmem:[%s2604_s30 + $0x70] sm:$0xff] %v1025_v19  ;;  %1873 = vst [vmem:[%s2604_s30 + $0x78] sm:$0xff] %v1865_v38 }
 0x184   : > { %v2141_v21 = vpop.eup %2140 }
 0x185   : > { %v2143_v2 = vpop.eup %2142  ;;  %v919_v51 = vxor.u32 2147483648, %v2141_v21 }
 0x186   : > { %v916_v58 = vxor.u32 2147483648, %v2143_v2 }
 0x187   : > { %v920_v3 = vsel %vm918_vm9, %v919_v51, %v2143_v2  ;;  %v1759_v41 = vsel %vm1757_vm10, %v919_v51, %v2143_v2 }
 0x188   : > { %v917_v48 = vsel %vm915_vm11, %v2141_v21, %v916_v58  ;;  %v1756_v25 = vsel %vm1754_vm12, %v2141_v21, %v916_v58 }
 0x189   : > { %v921_v40 = vsel %vm914_vm13, %v917_v48, %v920_v3  ;;  %v1760_v26 = vsel %vm1753_vm14, %v1756_v25, %v1759_v41 }
 0x18a   : > { %v922_v22 = vsel %vm912_vm15, nan, %v921_v40  ;;  %v1761_v50 = vsel %vm912_vm15, nan, %v1760_v26 }
 0x18b   : > { %1032 = vst [vmem:[%s2604_s30 + $0x60] sm:$0xff] %v922_v22  ;;  %1872 = vst [vmem:[%s2604_s30 + $0x68] sm:$0xff] %v1761_v50 }
 0x18c   : > { %2158 = shalt.err (!%p2155_p3)
}
 0x18d   : > { %s2159_s23 = scalar_lea.hbm %s3042_s13, 2048  ;;  %s2163_s26 = scalar_lea.hbm %s3093_s2, 8192 }
 0x18e   : > { %p2160_p4 = scmp.ne.s32.totalorder %s3042_s13, %s2159_s23  ;;  %p2164_p9 = scmp.lt.s32.totalorder %s3042_s13, %s3093_s2 }
 0x18f   : > { %p2165_p10 = scmp.lt.s32.totalorder %s2163_s26, %s2159_s23 }
 0x190   : > { %p2161_p7 = pnand %p2160_p4, %p2270_p5 }
 0x191   : > { %p2166_p11 = por %p2165_p10, %p2164_p9 }
 0x192   : > { %p2162_p8 = pneg %p2161_p7 }
 0x194   : > { %p2167_p12 = pnand %p2166_p11, %p2162_p8 }
 0x196   : > { %2170 = shalt.err (!%p2167_p12)
}
 0x197   : > { %s2215_s29 = smov 256   ;;  %s2216_s30 = smov 16  }
 0x198   : > { %2062 = dma.vmem_to_hbm [thread:$0]  (%p2270_p5), %s3044_s6, 2048, %s3042_s13, %s3051_s14, %s2215_s29, %s2215_s29, %s2216_s30  }
 0x199 PF: > { %p2068_p13 = scmp.ge.s32.totalorder %s2205_s12, 2  ;;  %s1904_s3 = sand.u32 1, %s2193_s9  }
 0x19a   : > { %s1905_s4 = scalar_lea.sflag [#allocation3], %s1904_s3 }
 0x19b   : > { %p2065_p0 = pnand %p2068_p13, %p2274_p6 }
 0x19d   : > { %p2066_p1 = pneg %p2065_p0 }
 0x19f   : > { %2188 = dma.done.wait (%p2066_p1), %s1905_s4, 2048  }
 0x1a0   : > { %2190 = vsyncadd (%p2066_p1), %s1905_s4, 4294965248  ;;  %p12_p2 = scmp.ge.s32.totalorder %s2257_s15, 6   ;;  %s3110_s9 = smov %s2197_s10 }
 0x1a1   : > { %s3111_s10 = smov %s2201_s11  ;;  %s3112_s11 = smov %s2268_s18 }
 0x1a2   : > { %s3113_s12 = smov %s2257_s15  ;;  %14 = sbr.rel (!%p12_p2) target bundleno = 3 (0x3), region = 63 }
 0x1a7   :  { %1910 = vsyncpa [#allocation3], 1 }
 0x1a8   :  { %1912 = vsyncpa [#allocation3 + $0x1], 1 }

</bundles_post_ra>
